<compile_context>
chip_gen: v7x
topology: tpu7x:2x2x1
jax: 0.10.0
libtpu: 0.0.40
codegen_flags: <defaults>
</compile_context>

<pallas_src>
import functools

import jax
import jax.numpy as jnp
from jax import lax
from jax.experimental import pallas as pl
from jax.experimental.pallas import tpu as pltpu

COMPUTE_DTYPE = jnp.bfloat16  # MXU operand dtype; accumulate + epilogue in f32.


# ----------------------------- sizing helpers ------------------------------ #

def _vmem_limit_bytes() -> int:
    """Scoped-VMEM limit: ~3/4 of physical (96 MiB on 128-MiB v5e/v6e, 48 MiB
    on 64-MiB v7x), overriding the small per-generation scoped defaults."""
    try:
        cap = int(pltpu.get_tpu_info().vmem_capacity_bytes)
    except Exception:
        cap = 64 * 1024 * 1024          # conservative (v7x-sized) fallback
    return min((cap * 3) // 4, 96 * 1024 * 1024)


def _choose_point_tile(n_points: int, vmem_budget: int) -> int:
    """Largest lane/sublane-friendly point tile whose fused intermediates fit
    the VMEM budget.  Per-row footprint ~ f32 h1/h2/h3 + bf16 MXU-operand
    copies, x2 head-room for compiler temporaries; 12 MiB fixed for weights
    (double-buffered), input blocks and misc.  Minimum tile is 128 — ragged
    tails are masked in-kernel, never handled with a full-extent block."""
    per_row = 2 * ((64 + 128 + 1024) * 4 + (64 + 128 + 4) * 2)
    fixed = 12 * 1024 * 1024
    for tn in (4096, 2048, 1024, 512, 256, 128):
        if tn <= 128:
            return 128
        if tn * per_row + fixed <= vmem_budget and tn <= n_points:
            return tn
    return 128


# ------------- fused conv1-3 + BN + ReLU + (deferred-bias) point-max -------- #

def _conv_max_kernel(x_ref, w1_ref, b1_ref, w2_ref, b2_ref, w3_ref, o_ref,
                     *, n_valid, tiles_per_split, needs_mask):
    # x_ref : (1, TN, C_in) f32     w*: bf16 resident     b*: (1, C) f32
    # o_ref : (1, 1, 1024) f32 running max of the RAW conv3 pre-activation,
    #         resident across the point-tile (last, "arbitrary") grid axis.
    s = pl.program_id(1)
    t = pl.program_id(2)

    @pl.when(t == 0)
    def _init():
        o_ref[...] = jnp.full(o_ref.shape, -jnp.inf, o_ref.dtype)

    # conv1 + bn1 + relu.  (K = C_in is tiny; a VPU broadcast-FMA alternative
    # would free a few MXU passes on v6e/v7x but needs cross-lane broadcasts
    # of the narrow lane-padded input — kept on the MXU.)
    x = x_ref[0].astype(w1_ref.dtype)                       # (TN, C_in) bf16
    h = jnp.dot(x, w1_ref[...], preferred_element_type=jnp.float32)
    h = jnp.maximum(h + b1_ref[...], 0.0)
    # conv2 + bn2 + relu
    h = jnp.dot(h.astype(w2_ref.dtype), w2_ref[...],
                preferred_element_type=jnp.float32)
    h = jnp.maximum(h + b2_ref[...], 0.0)
    # conv3 only — bn3 bias + ReLU are deferred to the fc-head kernel (exact:
    # max commutes with the per-channel bias add; ReLU is monotone).
    h = jnp.dot(h.astype(w3_ref.dtype), w3_ref[...],
                preferred_element_type=jnp.float32)         # (TN, 1024) f32

    def _accum(vals):
        o_ref[...] = jnp.maximum(
            o_ref[...], jnp.max(vals, axis=0, keepdims=True)[None])

    if needs_mask:
        tn = x_ref.shape[1]
        tile_start = (s * tiles_per_split + t) * tn

        @pl.when(tile_start + tn <= n_valid)        # fully valid tile: no select
        def _full_tile():
            _accum(h)

        @pl.when(tile_start + tn > n_valid)         # ragged/padded tile: mask
        def _ragged_tile():
            rows = lax.broadcasted_iota(jnp.int32, (tn, 1), 0) + tile_start
            _accum(jnp.where(rows < n_valid, h, -jnp.inf))
    else:
        _accum(h)


def conv_stack_and_partial_max(x_pts, params):
    """x_pts: (B, N, C_in) f32 -> (B, S, 1024) f32 partial maxes of the raw
    conv3 pre-activation (S = 1 or 2 point-splits)."""
    B, N, C_in = x_pts.shape
    vmem_limit = _vmem_limit_bytes()
    tn = _choose_point_tile(N, vmem_limit)
    total_tiles = pl.cdiv(N, tn)
    # v7x megacore: when the batch axis alone can't feed both TensorCores
    # (odd / unit batch), split the point tiles over a second parallel axis.
    split = 2 if (B % 2 == 1 and total_tiles >= 2) else 1
    tiles_per_split = pl.cdiv(total_tiles, split)
    n_pad = split * tiles_per_split * tn
    needs_mask = n_pad != N
    if needs_mask:
        x_pts = jnp.pad(x_pts, ((0, 0), (0, n_pad - N), (0, 0)))

    w1, b1, w2, b2, w3 = (params[k] for k in ("w1", "b1", "w2", "b2", "w3"))
    kernel = functools.partial(_conv_max_kernel, n_valid=N,
                               tiles_per_split=tiles_per_split,
                               needs_mask=needs_mask)

    flops = 2 * B * n_pad * (C_in * 64 + 64 * 128 + 128 * 1024)
    bytes_accessed = (
        x_pts.size * x_pts.dtype.itemsize
        + sum(a.size * a.dtype.itemsize for a in (w1, b1, w2, b2, w3))
        + B * split * 1024 * 4)

    return pl.pallas_call(
        kernel,
        out_shape=jax.ShapeDtypeStruct((B, split, 1024), jnp.float32),
        grid=(B, split, tiles_per_split),
        in_specs=[
            pl.BlockSpec((1, tn, C_in),
                         lambda b, s, t: (b, s * tiles_per_split + t, 0)),
            pl.BlockSpec(w1.shape, lambda b, s, t: (0, 0)),
            pl.BlockSpec(b1.shape, lambda b, s, t: (0, 0)),
            pl.BlockSpec(w2.shape, lambda b, s, t: (0, 0)),
            pl.BlockSpec(b2.shape, lambda b, s, t: (0, 0)),
            pl.BlockSpec(w3.shape, lambda b, s, t: (0, 0)),
        ],
        out_specs=pl.BlockSpec((1, 1, 1024), lambda b, s, t: (b, s, 0)),
        compiler_params=pltpu.CompilerParams(
            dimension_semantics=("parallel", "parallel", "arbitrary"),
            vmem_limit_bytes=vmem_limit),
        cost_estimate=pl.CostEstimate(
            flops=flops, transcendentals=0, bytes_accessed=bytes_accessed),
    )(x_pts, w1, b1, w2, b2, w3)


# ------------- fused (deferred conv3 epilogue) + fc1-3 (+ BN + ReLU) -------- #

def _fc_head_kernel(p_ref, b3_ref, w4_ref, b4_ref, w5_ref, b5_ref, w6_ref,
                    b6_ref, o_ref):
    # Deferred conv3 epilogue: combine per-split partial maxes, then add the
    # folded bn3 bias and apply ReLU exactly once on the (B, 1024) feature.
    p = p_ref[...]                                   # (B, S, 1024) f32
    g = p[:, 0, :]
    for si in range(1, p.shape[1]):
        g = jnp.maximum(g, p[:, si, :])
    g = jnp.maximum(g + b3_ref[...], 0.0)            # (B, 1024) f32

    h = jnp.dot(g.astype(w4_ref.dtype), w4_ref[...],
                preferred_element_type=jnp.float32)
    h = jnp.maximum(h + b4_ref[...], 0.0)            # fc1 + bn4 + relu
    h = jnp.dot(h.astype(w5_ref.dtype), w5_ref[...],
                preferred_element_type=jnp.float32)
    h = jnp.maximum(h + b5_ref[...], 0.0)            # fc2 + bn5 + relu
    h = jnp.dot(h.astype(w6_ref.dtype), w6_ref[...],
                preferred_element_type=jnp.float32)
    o_ref[...] = (h + b6_ref[...]).astype(o_ref.dtype)   # fc3, lane-dense padded


def fc_head(partials, params, out_features):
    """partials: (B, S, 1024) raw-max partials -> (B, out_features) f32."""
    B = partials.shape[0]
    b3, w4, b4, w5, b5, w6, b6 = (
        params[k] for k in ("b3", "w4", "b4", "w5", "b5", "w6", "b6"))
    out_pad = w6.shape[1]

    flops = 2 * B * (1024 * 512 + 512 * 256 + 256 * out_pad)
    bytes_accessed = (
        partials.size * partials.dtype.itemsize
        + sum(a.size * a.dtype.itemsize for a in (b3, w4, b4, w5, b5, w6, b6))
        + B * out_pad * 4)

    feat = pl.pallas_call(
        _fc_head_kernel,
        out_shape=jax.ShapeDtypeStruct((B, out_pad), jnp.float32),
        grid=(1,),
        in_specs=[
            pl.BlockSpec(partials.shape, lambda i: (0, 0, 0)),
            pl.BlockSpec(b3.shape, lambda i: (0, 0)),
            pl.BlockSpec(w4.shape, lambda i: (0, 0)),
            pl.BlockSpec(b4.shape, lambda i: (0, 0)),
            pl.BlockSpec(w5.shape, lambda i: (0, 0)),
            pl.BlockSpec(b5.shape, lambda i: (0, 0)),
            pl.BlockSpec(w6.shape, lambda i: (0, 0)),
            pl.BlockSpec(b6.shape, lambda i: (0, 0)),
        ],
        out_specs=pl.BlockSpec((B, out_pad), lambda i: (0, 0)),
        compiler_params=pltpu.CompilerParams(
            dimension_semantics=("arbitrary",)),
        cost_estimate=pl.CostEstimate(
            flops=flops, transcendentals=0, bytes_accessed=bytes_accessed),
    )(partials, b3, w4, b4, w5, b5, w6, b6)
    return feat[:, :out_features]


# --------------------------- parameter construction ------------------------ #

def _make_bn_linear_layer(key, c_in, c_out, eps=1e-5):
    """(Conv1d(k=1)|Linear) + BatchNorm1d (eval mode), folded into one
    effective (c_in, c_out) bf16 weight and (1, c_out) f32 bias."""
    kw, kb, kg, kbt, km, kv = jax.random.split(key, 6)
    w = 0.05 * jax.random.normal(kw, (c_out, c_in), jnp.float32)   # torch (out,in)
    b = 0.05 * jax.random.normal(kb, (c_out,), jnp.float32)
    gamma = 1.0 + 0.1 * jax.random.normal(kg, (c_out,), jnp.float32)
    beta = 0.1 * jax.random.normal(kbt, (c_out,), jnp.float32)
    running_mean = 0.1 * jax.random.normal(km, (c_out,), jnp.float32)
    running_var = 0.9 + 0.1 * jnp.abs(jax.random.normal(kv, (c_out,), jnp.float32))
    s = gamma / jnp.sqrt(running_var + eps)
    w_eff = (w.T * s[None, :]).astype(COMPUTE_DTYPE)            # (c_in, c_out)
    b_eff = ((b - running_mean) * s + beta).reshape(1, c_out)   # (1, c_out) f32
    return w_eff, b_eff


def init_params(key, input_dim, output_dim):
    keys = jax.random.split(key, 7)
    params = {}
    params["w1"], params["b1"] = _make_bn_linear_layer(keys[0], input_dim, 64)
    params["w2"], params["b2"] = _make_bn_linear_layer(keys[1], 64, 128)
    params["w3"], params["b3"] = _make_bn_linear_layer(keys[2], 128, 1024)
    params["w4"], params["b4"] = _make_bn_linear_layer(keys[3], 1024, 512)
    params["w5"], params["b5"] = _make_bn_linear_layer(keys[4], 512, 256)
    # fc3: pad the output channels to a 128-multiple so the final matmul and
    # store are lane-dense; wrapper slices back to input_dim*output_dim.
    kw, kb = jax.random.split(keys[5])
    out_features = input_dim * output_dim
    out_pad = max(128, ((out_features + 127) // 128) * 128)
    w6 = 0.05 * jax.random.normal(kw, (out_features, 256), jnp.float32)
    b6 = 0.05 * jax.random.normal(kb, (out_features,), jnp.float32)
    w6_p = jnp.zeros((256, out_pad), jnp.float32).at[:, :out_features].set(w6.T)
    b6_p = jnp.zeros((1, out_pad), jnp.float32).at[0, :out_features].set(b6)
    params["w6"] = w6_p.astype(COMPUTE_DTYPE)
    params["b6"] = b6_p
    return params


# -------------------------------- forward ---------------------------------- #

def transformation_net_forward(x, params, input_dim, output_dim):
    """x: (B, input_dim, N) float32 — same NCW layout as the PyTorch Conv1d input."""
    B, C, N = x.shape
    assert C == input_dim
    # torch's view(-1, output_dim, output_dim) on (B, input_dim*output_dim)
    # requires input_dim == output_dim (standard T-Net usage).
    assert input_dim == output_dim
    x_pts = jnp.transpose(x, (0, 2, 1))                    # (B, N, C_in) points-major
    partials = conv_stack_and_partial_max(x_pts, params)   # (B, S, 1024) raw maxes
    feat = fc_head(partials, params, input_dim * output_dim)
    eye = jnp.eye(output_dim, dtype=feat.dtype)
    return feat.reshape(-1, output_dim, output_dim) + eye


# ------------------------- plain-JAX reference (test) ---------------------- #

def _reference_forward(x, params, input_dim, output_dim):
    def dense(h, w, b):
        return jnp.dot(h.astype(w.dtype), w,
                       preferred_element_type=jnp.float32) + b
    x_pts = jnp.transpose(x, (0, 2, 1))
    h = jax.nn.relu(dense(x_pts, params["w1"], params["b1"]))
    h = jax.nn.relu(dense(h, params["w2"], params["b2"]))
    h = jax.nn.relu(dense(h, params["w3"], params["b3"]))
    g = jnp.max(h, axis=1)
    h = jax.nn.relu(dense(g, params["w4"], params["b4"]))
    h = jax.nn.relu(dense(h, params["w5"], params["b5"]))
    feat = dense(h, params["w6"], params["b6"])[:, : input_dim * output_dim]
    eye = jnp.eye(output_dim, dtype=feat.dtype)
    return feat.reshape(-1, output_dim, output_dim) + eye


# --------------------------------- main ------------------------------------ #

if __name__ == "__main__":
    INPUT_DIM = 4
    OUTPUT_DIM = 4
    BATCH = 2
    N_POINTS = 16

    key = jax.random.PRNGKey(0)
    k_params, k_x, k_x1 = jax.random.split(key, 3)

    params = init_params(k_params, INPUT_DIM, OUTPUT_DIM)
    fwd = jax.jit(functools.partial(
        transformation_net_forward, input_dim=INPUT_DIM, output_dim=OUTPUT_DIM))

    # Case 1: even batch (megacore via batch axis), ragged N (mask path).
    x = jax.random.normal(k_x, (BATCH, INPUT_DIM, N_POINTS), jnp.float32)
    out = jax.block_until_ready(fwd(x, params))
    assert out.shape == (BATCH, OUTPUT_DIM, OUTPUT_DIM)
    assert bool(jnp.all(jnp.isfinite(out)))
    ref = _reference_forward(x, params, INPUT_DIM, OUTPUT_DIM)
    assert bool(jnp.allclose(out, ref, atol=2e-2, rtol=2e-2))

    # Case 2: unit batch + N > tile -> exercises the point-split (partial-max)
    # path and the ragged/full pl.when branches.
    x1 = jax.random.normal(k_x1, (1, INPUT_DIM, 300), jnp.float32)
    out1 = jax.block_until_ready(fwd(x1, params))
    assert out1.shape == (1, OUTPUT_DIM, OUTPUT_DIM)
    assert bool(jnp.all(jnp.isfinite(out1)))
    ref1 = _reference_forward(x1, params, INPUT_DIM, OUTPUT_DIM)
    assert bool(jnp.allclose(out1, ref1, atol=2e-2, rtol=2e-2))

    print("KERNEL_OK")
</pallas_src>

<mosaic_0001>
module attributes {stable_mosaic.version = 11 : i64} {
  func.func @_conv_max_kernel(%arg0: i32, %arg1: i32, %arg2: i32, %arg3: memref<1x128x4xf32, #tpu.memory_space<vmem>>, %arg4: memref<4x64xbf16, #tpu.memory_space<vmem>>, %arg5: memref<1x64xf32, #tpu.memory_space<vmem>>, %arg6: memref<64x128xbf16, #tpu.memory_space<vmem>>, %arg7: memref<1x128xf32, #tpu.memory_space<vmem>>, %arg8: memref<128x1024xbf16, #tpu.memory_space<vmem>>, %arg9: memref<1x1x1024xf32, #tpu.memory_space<vmem>>) attributes {dimension_semantics = [#tpu.dimension_semantics<parallel>, #tpu.dimension_semantics<parallel>, #tpu.dimension_semantics<arbitrary>], iteration_bounds = array<i64: 2, 1, 1>, scalar_prefetch = 0 : i64, scratch_operands = 0 : i64, tpu.core_type = #tpu.core_type<tc>, window_params = [{transform_indices = @transform_0, window_bounds = array<i64: 1, 128, 4>}, {pipeline_mode = #tpu.pipeline_mode<synchronous>, transform_indices = @transform_1, window_bounds = array<i64: 4, 64>}, {pipeline_mode = #tpu.pipeline_mode<synchronous>, transform_indices = @transform_2, window_bounds = array<i64: 1, 64>}, {pipeline_mode = #tpu.pipeline_mode<synchronous>, transform_indices = @transform_3, window_bounds = array<i64: 64, 128>}, {pipeline_mode = #tpu.pipeline_mode<synchronous>, transform_indices = @transform_4, window_bounds = array<i64: 1, 128>}, {pipeline_mode = #tpu.pipeline_mode<synchronous>, transform_indices = @transform_5, window_bounds = array<i64: 128, 1024>}, {transform_indices = @transform_6, window_bounds = array<i64: 1, 1, 1024>}]} {
    %c0_i32 = arith.constant 0 : i32
    %0 = arith.cmpi eq, %arg2, %c0_i32 : i32
    %1 = arith.extui %0 : i1 to i32
    %c0_i32_0 = arith.constant 0 : i32
    %2 = arith.cmpi ne, %1, %c0_i32_0 : i32
    scf.if %2 {
      %cst_22 = arith.constant 0xFF800000 : f32
      %35 = vector.broadcast %cst_22 : f32 to vector<1x1x1024xf32>
      %c0_23 = arith.constant 0 : index
      %c0_24 = arith.constant 0 : index
      %c0_25 = arith.constant 0 : index
      %36 = vector.load %arg9[%c0_23, %c0_24, %c0_25] : memref<1x1x1024xf32, #tpu.memory_space<vmem>>, vector<1x1x1024xf32>
      tpu.vector_store %arg9[%c0_23, %c0_24, %c0_25], %35 {strides = array<i32>} : memref<1x1x1024xf32, #tpu.memory_space<vmem>>, vector<1x1x1024xf32>,
    } else {
    }
    %c0 = arith.constant 0 : index
    %c0_1 = arith.constant 0 : index
    %c0_2 = arith.constant 0 : index
    %3 = vector.load %arg3[%c0, %c0_1, %c0_2] : memref<1x128x4xf32, #tpu.memory_space<vmem>>, vector<1x128x4xf32>
    %4 = vector.shape_cast %3 : vector<1x128x4xf32> to vector<128x4xf32>
    %5 = arith.truncf %4 : vector<128x4xf32> to vector<128x4xbf16>
    %c0_3 = arith.constant 0 : index
    %c0_4 = arith.constant 0 : index
    %6 = vector.load %arg4[%c0_3, %c0_4] : memref<4x64xbf16, #tpu.memory_space<vmem>>, vector<4x64xbf16>
    %cst = arith.constant dense<0.000000e+00> : vector<128x64xf32>
    %7 = tpu.matmul %5, %6, %cst {dimension_numbers = #tpu.dot_dimension_numbers<[1], [0], [0], [1], [0, 0, 1, 1], [], []>} : vector<128x4xbf16>, vector<4x64xbf16>, vector<128x64xf32> -> vector<128x64xf32>
    %c0_5 = arith.constant 0 : index
    %c0_6 = arith.constant 0 : index
    %8 = vector.load %arg5[%c0_5, %c0_6] : memref<1x64xf32, #tpu.memory_space<vmem>>, vector<1x64xf32>
    %9 = vector.broadcast %8 : vector<1x64xf32> to vector<128x64xf32>
    %10 = arith.addf %7, %9 : vector<128x64xf32>
    %cst_7 = arith.constant 0.000000e+00 : f32
    %11 = vector.broadcast %cst_7 : f32 to vector<128x64xf32>
    %12 = arith.maximumf %10, %11 : vector<128x64xf32>
    %13 = arith.truncf %12 : vector<128x64xf32> to vector<128x64xbf16>
    %c0_8 = arith.constant 0 : index
    %c0_9 = arith.constant 0 : index
    %14 = vector.load %arg6[%c0_8, %c0_9] : memref<64x128xbf16, #tpu.memory_space<vmem>>, vector<64x128xbf16>
    %cst_10 = arith.constant dense<0.000000e+00> : vector<128x128xf32>
    %15 = tpu.matmul %13, %14, %cst_10 {dimension_numbers = #tpu.dot_dimension_numbers<[1], [0], [0], [1], [0, 0, 1, 1], [], []>} : vector<128x64xbf16>, vector<64x128xbf16>, vector<128x128xf32> -> vector<128x128xf32>
    %c0_11 = arith.constant 0 : index
    %c0_12 = arith.constant 0 : index
    %16 = vector.load %arg7[%c0_11, %c0_12] : memref<1x128xf32, #tpu.memory_space<vmem>>, vector<1x128xf32>
    %17 = vector.broadcast %16 : vector<1x128xf32> to vector<128x128xf32>
    %18 = arith.addf %15, %17 : vector<128x128xf32>
    %cst_13 = arith.constant 0.000000e+00 : f32
    %19 = vector.broadcast %cst_13 : f32 to vector<128x128xf32>
    %20 = arith.maximumf %18, %19 : vector<128x128xf32>
    %21 = arith.truncf %20 : vector<128x128xf32> to vector<128x128xbf16>
    %c0_14 = arith.constant 0 : index
    %c0_15 = arith.constant 0 : index
    %22 = vector.load %arg8[%c0_14, %c0_15] : memref<128x1024xbf16, #tpu.memory_space<vmem>>, vector<128x1024xbf16>
    %cst_16 = arith.constant dense<0.000000e+00> : vector<128x1024xf32>
    %23 = tpu.matmul %21, %22, %cst_16 {dimension_numbers = #tpu.dot_dimension_numbers<[1], [0], [0], [1], [0, 0, 1, 1], [], []>} : vector<128x128xbf16>, vector<128x1024xbf16>, vector<128x1024xf32> -> vector<128x1024xf32>
    %c1_i32 = arith.constant 1 : i32
    %24 = arith.muli %arg1, %c1_i32 : i32
    %25 = arith.addi %24, %arg2 : i32
    %c128_i32 = arith.constant 128 : i32
    %26 = arith.muli %25, %c128_i32 : i32
    %c128_i32_17 = arith.constant 128 : i32
    %27 = arith.addi %26, %c128_i32_17 : i32
    %c16_i32 = arith.constant 16 : i32
    %28 = arith.cmpi sle, %27, %c16_i32 : i32
    %29 = arith.extui %28 : i1 to i32
    %c0_i32_18 = arith.constant 0 : i32
    %30 = arith.cmpi ne, %29, %c0_i32_18 : i32
    scf.if %30 {
      %c0_22 = arith.constant 0 : index
      %c0_23 = arith.constant 0 : index
      %c0_24 = arith.constant 0 : index
      %35 = vector.load %arg9[%c0_22, %c0_23, %c0_24] : memref<1x1x1024xf32, #tpu.memory_space<vmem>>, vector<1x1x1024xf32>
      %cst_25 = arith.constant dense<0xFF800000> : vector<1024xf32>
      %36 = vector.multi_reduction <maximumf>, %23, %cst_25 [0] : vector<128x1024xf32> to vector<1024xf32>
      %37 = vector.shape_cast %36 : vector<1024xf32> to vector<1x1024xf32>
      %38 = vector.shape_cast %37 : vector<1x1024xf32> to vector<1x1x1024xf32>
      %39 = arith.maximumf %35, %38 : vector<1x1x1024xf32>
      %c0_26 = arith.constant 0 : index
      %c0_27 = arith.constant 0 : index
      %c0_28 = arith.constant 0 : index
      %40 = vector.load %arg9[%c0_26, %c0_27, %c0_28] : memref<1x1x1024xf32, #tpu.memory_space<vmem>>, vector<1x1x1024xf32>
      tpu.vector_store %arg9[%c0_26, %c0_27, %c0_28], %39 {strides = array<i32>} : memref<1x1x1024xf32, #tpu.memory_space<vmem>>, vector<1x1x1024xf32>,
    } else {
    }
    %c128_i32_19 = arith.constant 128 : i32
    %31 = arith.addi %26, %c128_i32_19 : i32
    %c16_i32_20 = arith.constant 16 : i32
    %32 = arith.cmpi sgt, %31, %c16_i32_20 : i32
    %33 = arith.extui %32 : i1 to i32
    %c0_i32_21 = arith.constant 0 : i32
    %34 = arith.cmpi ne, %33, %c0_i32_21 : i32
    scf.if %34 {
      %35 = tpu.iota {dimensions = array<i32: 0>} : vector<128x1xi32>
      %36 = vector.broadcast %26 : i32 to vector<128x1xi32>
      %37 = arith.addi %35, %36 : vector<128x1xi32>
      %c16_i32_22 = arith.constant 16 : i32
      %38 = vector.broadcast %c16_i32_22 : i32 to vector<128x1xi32>
      %39 = arith.cmpi slt, %37, %38 : vector<128x1xi32>
      %cst_23 = arith.constant 0xFF800000 : f32
      %40 = vector.shape_cast %39 : vector<128x1xi1> to vector<128x1xi1>
      %41 = vector.broadcast %40 : vector<128x1xi1> to vector<128x1024xi1>
      %42 = vector.broadcast %cst_23 : f32 to vector<128x1024xf32>
      %43 = arith.select %41, %23, %42 : vector<128x1024xi1>, vector<128x1024xf32>
      %c0_24 = arith.constant 0 : index
      %c0_25 = arith.constant 0 : index
      %c0_26 = arith.constant 0 : index
      %44 = vector.load %arg9[%c0_24, %c0_25, %c0_26] : memref<1x1x1024xf32, #tpu.memory_space<vmem>>, vector<1x1x1024xf32>
      %cst_27 = arith.constant dense<0xFF800000> : vector<1024xf32>
      %45 = vector.multi_reduction <maximumf>, %43, %cst_27 [0] : vector<128x1024xf32> to vector<1024xf32>
      %46 = vector.shape_cast %45 : vector<1024xf32> to vector<1x1024xf32>
      %47 = vector.shape_cast %46 : vector<1x1024xf32> to vector<1x1x1024xf32>
      %48 = arith.maximumf %44, %47 : vector<1x1x1024xf32>
      %c0_28 = arith.constant 0 : index
      %c0_29 = arith.constant 0 : index
      %c0_30 = arith.constant 0 : index
      %49 = vector.load %arg9[%c0_28, %c0_29, %c0_30] : memref<1x1x1024xf32, #tpu.memory_space<vmem>>, vector<1x1x1024xf32>
      tpu.vector_store %arg9[%c0_28, %c0_29, %c0_30], %48 {strides = array<i32>} : memref<1x1x1024xf32, #tpu.memory_space<vmem>>, vector<1x1x1024xf32>,
    } else {
    }
    return
  }
  func.func @transform_0(%arg0: i32, %arg1: i32, %arg2: i32) -> (i32, i32, i32) {
    %c1_i32 = arith.constant 1 : i32
    %0 = arith.muli %arg1, %c1_i32 : i32
    %1 = arith.addi %0, %arg2 : i32
    %c0_i32 = arith.constant 0 : i32
    %c0_i32_0 = arith.constant 0 : i32
    return %arg0, %1, %c0_i32 : i32, i32, i32
  }
  func.func @transform_1(%arg0: i32, %arg1: i32, %arg2: i32) -> (i32, i32) {
    %c0_i32 = arith.constant 0 : i32
    %c0_i32_0 = arith.constant 0 : i32
    %c0_i32_1 = arith.constant 0 : i32
    return %c0_i32, %c0_i32_0 : i32, i32
  }
  func.func @transform_2(%arg0: i32, %arg1: i32, %arg2: i32) -> (i32, i32) {
    %c0_i32 = arith.constant 0 : i32
    %c0_i32_0 = arith.constant 0 : i32
    %c0_i32_1 = arith.constant 0 : i32
    return %c0_i32, %c0_i32_0 : i32, i32
  }
  func.func @transform_3(%arg0: i32, %arg1: i32, %arg2: i32) -> (i32, i32) {
    %c0_i32 = arith.constant 0 : i32
    %c0_i32_0 = arith.constant 0 : i32
    %c0_i32_1 = arith.constant 0 : i32
    return %c0_i32, %c0_i32_0 : i32, i32
  }
  func.func @transform_4(%arg0: i32, %arg1: i32, %arg2: i32) -> (i32, i32) {
    %c0_i32 = arith.constant 0 : i32
    %c0_i32_0 = arith.constant 0 : i32
    %c0_i32_1 = arith.constant 0 : i32
    return %c0_i32, %c0_i32_0 : i32, i32
  }
  func.func @transform_5(%arg0: i32, %arg1: i32, %arg2: i32) -> (i32, i32) {
    %c0_i32 = arith.constant 0 : i32
    %c0_i32_0 = arith.constant 0 : i32
    %c0_i32_1 = arith.constant 0 : i32
    return %c0_i32, %c0_i32_0 : i32, i32
  }
  func.func @transform_6(%arg0: i32, %arg1: i32, %arg2: i32) -> (i32, i32, i32) {
    %c0_i32 = arith.constant 0 : i32
    %c0_i32_0 = arith.constant 0 : i32
    return %arg0, %arg1, %c0_i32 : i32, i32, i32
  }
}

module attributes {stable_mosaic.version = 11 : i64} {
  func.func @_fc_head_kernel(%arg0: i32, %arg1: memref<2x1x1024xf32, #tpu.memory_space<vmem>>, %arg2: memref<1x1024xf32, #tpu.memory_space<vmem>>, %arg3: memref<1024x512xbf16, #tpu.memory_space<vmem>>, %arg4: memref<1x512xf32, #tpu.memory_space<vmem>>, %arg5: memref<512x256xbf16, #tpu.memory_space<vmem>>, %arg6: memref<1x256xf32, #tpu.memory_space<vmem>>, %arg7: memref<256x128xbf16, #tpu.memory_space<vmem>>, %arg8: memref<1x128xf32, #tpu.memory_space<vmem>>, %arg9: memref<2x128xf32, #tpu.memory_space<vmem>>) attributes {dimension_semantics = [#tpu.dimension_semantics<arbitrary>], iteration_bounds = array<i64: 1>, scalar_prefetch = 0 : i64, scratch_operands = 0 : i64, tpu.core_type = #tpu.core_type<tc>, window_params = [{pipeline_mode = #tpu.pipeline_mode<synchronous>, transform_indices = @transform_0, window_bounds = array<i64: 2, 1, 1024>}, {pipeline_mode = #tpu.pipeline_mode<synchronous>, transform_indices = @transform_1, window_bounds = array<i64: 1, 1024>}, {pipeline_mode = #tpu.pipeline_mode<synchronous>, transform_indices = @transform_2, window_bounds = array<i64: 1024, 512>}, {pipeline_mode = #tpu.pipeline_mode<synchronous>, transform_indices = @transform_3, window_bounds = array<i64: 1, 512>}, {pipeline_mode = #tpu.pipeline_mode<synchronous>, transform_indices = @transform_4, window_bounds = array<i64: 512, 256>}, {pipeline_mode = #tpu.pipeline_mode<synchronous>, transform_indices = @transform_5, window_bounds = array<i64: 1, 256>}, {pipeline_mode = #tpu.pipeline_mode<synchronous>, transform_indices = @transform_6, window_bounds = array<i64: 256, 128>}, {pipeline_mode = #tpu.pipeline_mode<synchronous>, transform_indices = @transform_7, window_bounds = array<i64: 1, 128>}, {pipeline_mode = #tpu.pipeline_mode<synchronous>, transform_indices = @transform_8, window_bounds = array<i64: 2, 128>}]} {
    %c0 = arith.constant 0 : index
    %c0_0 = arith.constant 0 : index
    %c0_1 = arith.constant 0 : index
    %0 = vector.load %arg1[%c0, %c0_0, %c0_1] : memref<2x1x1024xf32, #tpu.memory_space<vmem>>, vector<2x1x1024xf32>
    %1 = vector.shape_cast %0 : vector<2x1x1024xf32> to vector<2x1024xf32>
    %c0_2 = arith.constant 0 : index
    %c0_3 = arith.constant 0 : index
    %2 = vector.load %arg2[%c0_2, %c0_3] : memref<1x1024xf32, #tpu.memory_space<vmem>>, vector<1x1024xf32>
    %3 = vector.broadcast %2 : vector<1x1024xf32> to vector<2x1024xf32>
    %4 = arith.addf %1, %3 : vector<2x1024xf32>
    %cst = arith.constant 0.000000e+00 : f32
    %5 = vector.broadcast %cst : f32 to vector<2x1024xf32>
    %6 = arith.maximumf %4, %5 : vector<2x1024xf32>
    %7 = arith.truncf %6 : vector<2x1024xf32> to vector<2x1024xbf16>
    %c0_4 = arith.constant 0 : index
    %c0_5 = arith.constant 0 : index
    %8 = vector.load %arg3[%c0_4, %c0_5] : memref<1024x512xbf16, #tpu.memory_space<vmem>>, vector<1024x512xbf16>
    %cst_6 = arith.constant dense<0.000000e+00> : vector<2x512xf32>
    %9 = tpu.matmul %7, %8, %cst_6 {dimension_numbers = #tpu.dot_dimension_numbers<[1], [0], [0], [1], [0, 0, 1, 1], [], []>} : vector<2x1024xbf16>, vector<1024x512xbf16>, vector<2x512xf32> -> vector<2x512xf32>
    %c0_7 = arith.constant 0 : index
    %c0_8 = arith.constant 0 : index
    %10 = vector.load %arg4[%c0_7, %c0_8] : memref<1x512xf32, #tpu.memory_space<vmem>>, vector<1x512xf32>
    %11 = vector.broadcast %10 : vector<1x512xf32> to vector<2x512xf32>
    %12 = arith.addf %9, %11 : vector<2x512xf32>
    %cst_9 = arith.constant 0.000000e+00 : f32
    %13 = vector.broadcast %cst_9 : f32 to vector<2x512xf32>
    %14 = arith.maximumf %12, %13 : vector<2x512xf32>
    %15 = arith.truncf %14 : vector<2x512xf32> to vector<2x512xbf16>
    %c0_10 = arith.constant 0 : index
    %c0_11 = arith.constant 0 : index
    %16 = vector.load %arg5[%c0_10, %c0_11] : memref<512x256xbf16, #tpu.memory_space<vmem>>, vector<512x256xbf16>
    %cst_12 = arith.constant dense<0.000000e+00> : vector<2x256xf32>
    %17 = tpu.matmul %15, %16, %cst_12 {dimension_numbers = #tpu.dot_dimension_numbers<[1], [0], [0], [1], [0, 0, 1, 1], [], []>} : vector<2x512xbf16>, vector<512x256xbf16>, vector<2x256xf32> -> vector<2x256xf32>
    %c0_13 = arith.constant 0 : index
    %c0_14 = arith.constant 0 : index
    %18 = vector.load %arg6[%c0_13, %c0_14] : memref<1x256xf32, #tpu.memory_space<vmem>>, vector<1x256xf32>
    %19 = vector.broadcast %18 : vector<1x256xf32> to vector<2x256xf32>
    %20 = arith.addf %17, %19 : vector<2x256xf32>
    %cst_15 = arith.constant 0.000000e+00 : f32
    %21 = vector.broadcast %cst_15 : f32 to vector<2x256xf32>
    %22 = arith.maximumf %20, %21 : vector<2x256xf32>
    %23 = arith.truncf %22 : vector<2x256xf32> to vector<2x256xbf16>
    %c0_16 = arith.constant 0 : index
    %c0_17 = arith.constant 0 : index
    %24 = vector.load %arg7[%c0_16, %c0_17] : memref<256x128xbf16, #tpu.memory_space<vmem>>, vector<256x128xbf16>
    %cst_18 = arith.constant dense<0.000000e+00> : vector<2x128xf32>
    %25 = tpu.matmul %23, %24, %cst_18 {dimension_numbers = #tpu.dot_dimension_numbers<[1], [0], [0], [1], [0, 0, 1, 1], [], []>} : vector<2x256xbf16>, vector<256x128xbf16>, vector<2x128xf32> -> vector<2x128xf32>
    %c0_19 = arith.constant 0 : index
    %c0_20 = arith.constant 0 : index
    %26 = vector.load %arg8[%c0_19, %c0_20] : memref<1x128xf32, #tpu.memory_space<vmem>>, vector<1x128xf32>
    %27 = vector.broadcast %26 : vector<1x128xf32> to vector<2x128xf32>
    %28 = arith.addf %25, %27 : vector<2x128xf32>
    %c0_21 = arith.constant 0 : index
    %c0_22 = arith.constant 0 : index
    %29 = vector.load %arg9[%c0_21, %c0_22] : memref<2x128xf32, #tpu.memory_space<vmem>>, vector<2x128xf32>
    tpu.vector_store %arg9[%c0_21, %c0_22], %28 {strides = array<i32>} : memref<2x128xf32, #tpu.memory_space<vmem>>, vector<2x128xf32>,
    return
  }
  func.func @transform_0(%arg0: i32) -> (i32, i32, i32) {
    %c0_i32 = arith.constant 0 : i32
    %c0_i32_0 = arith.constant 0 : i32
    %c0_i32_1 = arith.constant 0 : i32
    %c0_i32_2 = arith.constant 0 : i32
    return %c0_i32, %c0_i32_0, %c0_i32_1 : i32, i32, i32
  }
  func.func @transform_1(%arg0: i32) -> (i32, i32) {
    %c0_i32 = arith.constant 0 : i32
    %c0_i32_0 = arith.constant 0 : i32
    %c0_i32_1 = arith.constant 0 : i32
    return %c0_i32, %c0_i32_0 : i32, i32
  }
  func.func @transform_2(%arg0: i32) -> (i32, i32) {
    %c0_i32 = arith.constant 0 : i32
    %c0_i32_0 = arith.constant 0 : i32
    %c0_i32_1 = arith.constant 0 : i32
    return %c0_i32, %c0_i32_0 : i32, i32
  }
  func.func @transform_3(%arg0: i32) -> (i32, i32) {
    %c0_i32 = arith.constant 0 : i32
    %c0_i32_0 = arith.constant 0 : i32
    %c0_i32_1 = arith.constant 0 : i32
    return %c0_i32, %c0_i32_0 : i32, i32
  }
  func.func @transform_4(%arg0: i32) -> (i32, i32) {
    %c0_i32 = arith.constant 0 : i32
    %c0_i32_0 = arith.constant 0 : i32
    %c0_i32_1 = arith.constant 0 : i32
    return %c0_i32, %c0_i32_0 : i32, i32
  }
  func.func @transform_5(%arg0: i32) -> (i32, i32) {
    %c0_i32 = arith.constant 0 : i32
    %c0_i32_0 = arith.constant 0 : i32
    %c0_i32_1 = arith.constant 0 : i32
    return %c0_i32, %c0_i32_0 : i32, i32
  }
  func.func @transform_6(%arg0: i32) -> (i32, i32) {
    %c0_i32 = arith.constant 0 : i32
    %c0_i32_0 = arith.constant 0 : i32
    %c0_i32_1 = arith.constant 0 : i32
    return %c0_i32, %c0_i32_0 : i32, i32
  }
  func.func @transform_7(%arg0: i32) -> (i32, i32) {
    %c0_i32 = arith.constant 0 : i32
    %c0_i32_0 = arith.constant 0 : i32
    %c0_i32_1 = arith.constant 0 : i32
    return %c0_i32, %c0_i32_0 : i32, i32
  }
  func.func @transform_8(%arg0: i32) -> (i32, i32) {
    %c0_i32 = arith.constant 0 : i32
    %c0_i32_0 = arith.constant 0 : i32
    %c0_i32_1 = arith.constant 0 : i32
    return %c0_i32, %c0_i32_0 : i32, i32
  }
}

</mosaic_0001>

<bundles_post_ra>
// kernel: transformation_net_forward.2
= control target key start
LH: loop header
LB: loop body
LE: loop exit
PB: predicated region body
PF: predicated region fallthrough
CT: control target
= control target key end

     0   :  { %11 = vsyncpa [#allocation3], 0  ;;  %s2607_s21 = smov 0   ;;  %s2609_s22 = smov 0   ;;  %s2880_s0 = inlined_call_operand.vmem [shape: f32[2,128,4], index: 0, kind: input, shape index: {}]   ;;  %s2881_s1 = inlined_call_operand.vmem [shape: bf16[4,64], index: 1, kind: input, shape index: {}]   ;;  %s2882_s2 = inlined_call_operand.vmem [shape: f32[1,64], index: 2, kind: input, shape index: {}]   ;;  %s2883_s3 = inlined_call_operand.vmem [shape: bf16[64,128], index: 3, kind: input, shape index: {}]   ;;  %s2884_s4 = inlined_call_operand.vmem [shape: f32[1,128], index: 4, kind: input, shape index: {}]   ;;  %s2885_s5 = inlined_call_operand.hbm [shape: bf16[128,1024], index: 5, kind: input, shape index: {}]   ;;  %s2886_s6 = inlined_call_operand.vmem [shape: f32[2,1,1024], index: 6, kind: output, shape index: {}]  }
   0x1   :  { %s2611_s23 = smov 0  }
   0x2 LB: > { %s2304_s24 = sadd.s32 4294967295, %s2565_s23   ;;  %s36_s25 = sadd.s32 1, %s2561_s22  ;;  %s2565_s23 = sphi %s2611_s23, %s17_s23   ;;  %s2561_s22 = sphi %s2609_s22, %s2896_s22   ;;  %s2557_s21 = sphi %s2607_s21, %s2895_s21  }
   0x3   : > { %p38_p0 = scmp.ge.s32.totalorder %s36_s25, 2  ;;  %p2306_p1 = scmp.ge.s32.totalorder %s2565_s23, 1 }
   0x4   : > { %p204_p2 = scmp.lt.s32.totalorder %s2565_s23, 3  ;;  %p2632_p4 = scmp.eq.s32.totalorder %s2304_s24, 0 }
   0x5   : > { %s2898_s25 = smov (%p38_p0, %s36_s25), 0  ;;  %s2567_s28 = smov [#allocation2]  }
   0x6   : > { %p2628_p3 = pnand %p2306_p1, %p204_p2  ;;  %s228_s29 = sshll.u32 %s2567_s28, 4  ;;  %s229_s29 = int_to_ptr.vmem [resolvable:$true] %s228_s29 }
   0x7   : > { %s2891_s27 = scalar_select %p2632_p4, 1, 0 }
   0x8   : > { %s2890_s26 = scalar_select %p2628_p3, 1, 0 }
   0x9   : > { %p2471_p5 = pneg %p2628_p3  ;;  %s2511_s9 = scalar_lea.hbm %s2885_s5, 8192 }
   0xa   : > { %p2512_p7 = scmp.ne.s32.totalorder %s2885_s5, %s2511_s9  ;;  %p2518_p11 = scmp.lt.u32.totalorder %s2511_s9, %s2885_s5 }
   0xb   : > { %p2640_p6 = pnand %p2632_p4, %p2471_p5 }
   0xd   : > { %p2513_p8 = pneg %p2640_p6 }
   0xf   : > { %p2514_p9 = pnand %p2513_p8, %p2512_p7 }
  0x11   : > { %p2515_p10 = pneg %p2514_p9 }
  0x13   : > { %p2520_p12 = pnand %p2518_p11, %p2515_p10 }
  0x15   : > { %2523 = shalt.err (!%p2520_p12)
}
  0x16   : > { %s2524_s14 = scalar_lea.vmem %s229_s29, 8192  ;;  %p2532_p2 = scmp.lt.s32.totalorder %s229_s29, %s229_s29 }
  0x17   : > { %p2525_p13 = scmp.ne.s32.totalorder %s229_s29, %s2524_s14  ;;  %p2533_p5 = scmp.lt.s32.totalorder %s2524_s14, %s2524_s14 }
  0x19   : > { %p2527_p0 = pnand %p2525_p13, %p2513_p8  ;;  %p2534_p4 = por %p2533_p5, %p2532_p2 }
  0x1b   : > { %p2528_p1 = pneg %p2527_p0 }
  0x1d   : > { %p2535_p3 = pnand %p2534_p4, %p2528_p1 }
  0x1f   : > { %2538 = shalt.err (!%p2535_p3)
}
  0x20   : > { %s2568_s15 = smov 512   ;;  %s2569_s16 = smov 32  }
  0x21   : > { %2474 = dma.hbm_to_vmem [thread:$0]  (!%p2640_p6), %s2885_s5, 8192, %s229_s29, [#allocation3], %s2568_s15, %s2568_s15, %s2569_s16  }
  0x22   : > { %p2893_p7 = scmp.ne.s32.totalorder %s2890_s26, 0 }
  0x23   : > { %p2894_p9 = scmp.ne.s32.totalorder (!%p2893_p7), %s2891_s27, 0 }
  0x24   : > { %259 = sbr.rel (%p2893_p7) target bundleno = 831 (0x33f), region = 44 }
  0x2b   : > { %2552 = dma.done.wait (%p2894_p9), [#allocation3], 8192  }
  0x2c   : > { %2554 = vsyncadd (%p2894_p9), [#allocation3], 4294959104  ;;  %p299_p3 = scmp.lt.s32.totalorder %s2557_s21, 1  ;;  %vm380_vm0 = vcmask 1041408   ;;  %v347_v0 = vld [vmem:[%s2881_s1] sm:$0x3] }
  0x2d   : > { %vm355_vm1 = vcmask 31744   ;;  %2466 = vmatprep.subr.msk.bf16.mxu0 %vm380_vm0, %v347_v0  ;;  %v382_v3 = vsel %vm380_vm0, %v347_v0, 0  ;;  %v2507_v15 = vld [vmem:[%s2883_s3] sm:$0xff]   ;;  %v2508_v16 = vld [vmem:[%s2883_s3 + $0x8] sm:$0xff]   ;;  %v2509_v28 = vld [vmem:[%s2883_s3 + $0x10] sm:$0xff]   ;;  %vm544_vm2 = vcmask 523264  }
  0x2e   : > { %s2900_s21 = smov (!%p299_p3, %s2557_s21), 1  ;;  %2425 = vmatpush3.bf16.msra.mxu0 %v382_v3  ;;  %2442 = vmatprep.subr.bf16.mxu1 %v2507_v15  ;;  %v2510_v29 = vld [vmem:[%s2883_s3 + $0x18] sm:$0xff]   ;;  %v690_v30 = vld [vmem:[#allocation2] sm:$0xff]  ;;  %v2715_v32 = vld [vmem:[#allocation2 + $0x8] sm:$0xff] }
  0x2f   : > { %s2402_s19 = sshll.u32 %s2900_s21, 7  ;;  %2443 = vmatpush3.bf16.msra.mxu1 %v2507_v15  ;;  %v694_v31 = vld [vmem:[#allocation2 + $0x20] sm:$0xff]  ;;  %v2717_v35 = vld [vmem:[#allocation2 + $0x28] sm:$0xff]  ;;  %s2313_s17 = sshll.u32 %s2900_s21, 3 }
  0x30   : > { %s2674_s28 = scalar_lea.vmem %s2880_s0, %s2402_s19  ;;  %2444 = vmatprep.subr.bf16.mxu1 %v2508_v16  ;;  %v2336_v33 = vcombine.low %v690_v30, %v694_v31  ;;  %v2337_v34 = vcombine.high %v690_v30, %v694_v31  ;;  %v698_v36 = vld [vmem:[#allocation2 + $0x40] sm:$0xff]  ;;  %v2338_v38 = vcombine.low %v2715_v32, %v2717_v35  ;;  %v2339_v39 = vcombine.high %v2715_v32, %v2717_v35  ;;  %s316_s20 = scalar_lea.vmem %s2886_s6, %s2313_s17 }
  0x31   : > { %v323_v1 = vld [vmem:[%s2674_s28] sm:$0xff]  ;;  %v324_v2 = vld [vmem:[%s2674_s28 + $0x8] sm:$0xff]  ;;  %v325_v5 = vld [vmem:[%s2674_s28 + $0x10] sm:$0xff] }
  0x32   : > { %v339_v4 = vpack.c.bf16 %v324_v2, %v323_v1  ;;  %v326_v6 = vld [vmem:[%s2674_s28 + $0x18] sm:$0xff]  ;;  %v327_v7 = vld [vmem:[%s2674_s28 + $0x20] sm:$0xff]  ;;  %v328_v9 = vld [vmem:[%s2674_s28 + $0x28] sm:$0xff]  ;;  %1074 = vmatprep.subr.bf16.mxu0 %v2337_v34 }
  0x33   : > { %v340_v8 = vpack.c.bf16 %v326_v6, %v325_v5  ;;  %v341_v10 = vpack.c.bf16 %v328_v9, %v327_v7  ;;  %v329_v11 = vld [vmem:[%s2674_s28 + $0x30] sm:$0xff]  ;;  %v330_v12 = vld [vmem:[%s2674_s28 + $0x38] sm:$0xff]  ;;  %v331_v13 = vld [vmem:[%s2674_s28 + $0x40] sm:$0xff]  ;;  %2445 = vmatpush3.bf16.msra.mxu1 %v2508_v16 }
  0x34   : > { %2426 = vmatprep.mubr.msk.bf16.mxu0 %vm355_vm1, %v339_v4  ;;  %v332_v14 = vld [vmem:[%s2674_s28 + $0x48] sm:$0xff]  ;;  %v342_v17 = vpack.c.bf16 %v330_v12, %v329_v11  ;;  %v333_v19 = vld [vmem:[%s2674_s28 + $0x50] sm:$0xff]  ;;  %v334_v20 = vld [vmem:[%s2674_s28 + $0x58] sm:$0xff]  ;;  %2446 = vmatprep.subr.bf16.mxu1 %v2509_v28 }
  0x35   : > { %2427 = vmatmul.mubr.msk.bf16.vlgmr.msra.gmra.mrb[0].mxu0 %vm355_vm1, %v340_v8  ;;  %v343_v18 = vpack.c.bf16 %v332_v14, %v331_v13  ;;  %v335_v21 = vld [vmem:[%s2674_s28 + $0x60] sm:$0xff]  ;;  %v336_v22 = vld [vmem:[%s2674_s28 + $0x68] sm:$0xff]  ;;  %v344_v23 = vpack.c.bf16 %v334_v20, %v333_v19  ;;  %v337_v25 = vld [vmem:[%s2674_s28 + $0x70] sm:$0xff] }
  0x36   : > { %2430 = vmatprep.mubr.msk.bf16.mxu0 %vm355_vm1, %v341_v10  ;;  %v345_v24 = vpack.c.bf16 %v336_v22, %v335_v21  ;;  %v338_v26 = vld [vmem:[%s2674_s28 + $0x78] sm:$0xff]  ;;  %v702_v37 = vld [vmem:[#allocation2 + $0x60] sm:$0xff]  ;;  %1075 = vmatpush1.bf16.msra.mxu0 %v2336_v33  ;;  %v699_v7 = vld [vmem:[#allocation2 + $0x48] sm:$0xff] }
  0x37   : > { %v346_v27 = vpack.c.bf16 %v338_v26, %v337_v25  ;;  %2447 = vmatpush3.bf16.msra.mxu1 %v2509_v28  ;;  %v2345_v40 = vcombine.high %v698_v36, %v702_v37  ;;  %v706_v41 = vld [vmem:[#allocation2 + $0x80] sm:$0xff]  ;;  %v2344_v43 = vcombine.low %v698_v36, %v702_v37  ;;  %v703_v8 = vld [vmem:[#allocation2 + $0x68] sm:$0xff] }
  0x38   : > { %2448 = vmatprep.subr.bf16.mxu1 %v2510_v29  ;;  %v710_v42 = vld [vmem:[#allocation2 + $0xa0] sm:$0xff]  ;;  %v2347_v14 = vcombine.high %v699_v7, %v703_v8  ;;  %v715_v28 = vld [vmem:[#allocation2 + $0xc8] sm:$0xff] }
  0x39   : > { %1076 = vmatprep.subr.bf16.mxu0 %v2345_v40  ;;  %v2353_v44 = vcombine.high %v706_v41, %v710_v42  ;;  %v714_v45 = vld [vmem:[#allocation2 + $0xc0] sm:$0xff]  ;;  %v2352_v47 = vcombine.low %v706_v41, %v710_v42  ;;  %v727_v40 = vld [vmem:[#allocation2 + $0x128] sm:$0xff] }
  0x3a   : > { %v718_v46 = vld [vmem:[#allocation2 + $0xe0] sm:$0xff]  ;;  %1077 = vmatpush1.bf16.msra.mxu0 %v2344_v43 }
  0x3b   : > { %2449 = vmatpush3.bf16.msra.mxu1 %v2510_v29  ;;  %1078 = vmatprep.subr.bf16.mxu0 %v2353_v44  ;;  %v2361_v48 = vcombine.high %v714_v45, %v718_v46  ;;  %v722_v49 = vld [vmem:[#allocation2 + $0x100] sm:$0xff]  ;;  %v2360_v51 = vcombine.low %v714_v45, %v718_v46  ;;  %v719_v29 = vld [vmem:[#allocation2 + $0xe8] sm:$0xff] }
  0x3c   : > { %1187 = vmatprep.subr.bf16.mxu1 %v2339_v39  ;;  %v726_v50 = vld [vmem:[#allocation2 + $0x120] sm:$0xff]  ;;  %v2363_v39 = vcombine.high %v715_v28, %v719_v29  ;;  %v2362_v46 = vcombine.low %v715_v28, %v719_v29  ;;  %v697_v29 = vld [vmem:[#allocation2 + $0x38] sm:$0xff] }
  0x3d   : > { %2431 = vmatmul.mubr.msk.bf16.gmra.mrb[4].mxu0 %vm355_vm1, %v342_v17  ;;  %v2369_v52 = vcombine.high %v722_v49, %v726_v50  ;;  %v730_v53 = vld [vmem:[#allocation2 + $0x140] sm:$0xff]  ;;  %v2368_v55 = vcombine.low %v722_v49, %v726_v50  ;;  %v707_v17 = vld [vmem:[#allocation2 + $0x88] sm:$0xff] }
  0x3e   : > { %2434 = vmatprep.mubr.msk.bf16.mxu0 %vm355_vm1, %v343_v18  ;;  %1079 = vmatpush1.bf16.msra.mxu0 %v2352_v47  ;;  %v734_v54 = vld [vmem:[#allocation2 + $0x160] sm:$0xff]  ;;  %v711_v18 = vld [vmem:[#allocation2 + $0xa8] sm:$0xff] }
  0x3f   : > { %1080 = vmatprep.subr.bf16.mxu0 %v2361_v48  ;;  %v2377_v56 = vcombine.high %v730_v53, %v734_v54  ;;  %v2376_v57 = vcombine.low %v730_v53, %v734_v54  ;;  %v2726_v58 = vld [vmem:[%s2882_s2] ss:$0 sm:$0xff]  ;;  %v2355_v26 = vcombine.high %v707_v17, %v711_v18  ;;  %v2354_v34 = vcombine.low %v707_v17, %v711_v18  ;;  %v731_v50 = vld [vmem:[#allocation2 + $0x148] sm:$0xff] }
  0x40   : > { %v747_v17 = vld [vmem:[#allocation2 + $0x1c8] sm:$0xff] }
  0x42   : > { %1081 = vmatpush1.bf16.msra.mxu0 %v2360_v51  ;;  %v735_v51 = vld [vmem:[#allocation2 + $0x168] sm:$0xff] }
  0x43   : > { %1082 = vmatprep.subr.bf16.mxu0 %v2369_v52 }
  0x45   : > { %2435 = vmatmul.mubr.msk.bf16.gmra.mrb[8].mxu0 %vm355_vm1, %v344_v23 }
  0x46   : > { %2438 = vmatprep.mubr.msk.bf16.mxu0 %vm355_vm1, %v345_v24  ;;  %1083 = vmatpush1.bf16.msra.mxu0 %v2368_v55  ;;  %v2346_v24 = vcombine.low %v699_v7, %v703_v8  ;;  %v738_v8 = vld [vmem:[#allocation2 + $0x180] sm:$0xff] }
  0x47   : > { %1084 = vmatprep.subr.bf16.mxu0 %v2377_v56 }
  0x4a   : > { %1085 = vmatpush1.bf16.msra.mxu0 %v2376_v57 }
  0x4d   : > { %2439 = vmatmul.mubr.msk.bf16.gmra.mrb[12].mxu0 %vm355_vm1, %v346_v27 }
 0x108   : > { %v2428_v59 = vpop.f32.mrb[0].mxu0 }
 0x109   : > { %v427_v60 = vadd.f32 %v2428_v59, %v2726_v58  ;;  %v418_v61 = vpop.f32.mrb[1].mxu0  ;;  %v2379_v59 = vcombine.high %v731_v50, %v735_v51 }
 0x10a   : > { %v419_v62 = vadd.f32 %v2726_v58, %v418_v61  ;;  %v2429_v63 = vpop.f32.mrb[2].mxu0 }
 0x10b   : > { %v430_v0 = vadd.f32 %v2429_v63, %v2726_v58  ;;  %v421_v1 = vpop.f32.mrb[3].mxu0  ;;  %v483_v3 = vmax.f32 %v427_v60, 0.0 }
 0x10c   : > { %v422_v2 = vadd.f32 %v2726_v58, %v421_v1  ;;  %v481_v5 = vmax.f32 %v419_v62, 0.0 }
 0x10d   : > { %v484_v4 = vmax.f32 %v430_v0, 0.0 }
 0x10e   : > { %v482_v6 = vmax.f32 %v422_v2, 0.0 }
 0x10f   : > { %v498_v9 = vpack.c.bf16 %v484_v4, %v483_v3  ;;  %v2378_v3 = vcombine.low %v731_v50, %v735_v51 }
 0x110   : > { %v2432_v10 = vpop.f32.mrb[4].mxu0  ;;  %v497_v11 = vpack.c.bf16 %v482_v6, %v481_v5 }
 0x111   : > { %v443_v12 = vadd.f32 %v2432_v10, %v2726_v58  ;;  %v434_v13 = vpop.f32.mrb[5].mxu0  ;;  %v739_v10 = vld [vmem:[#allocation2 + $0x188] sm:$0xff] }
 0x112   : > { %v435_v15 = vadd.f32 %v2726_v58, %v434_v13  ;;  %2450 = vmatprep.mubr.msk.bf16.mxu1 %vm544_vm2, %v497_v11  ;;  %v2433_v16 = vpop.f32.mrb[6].mxu0 }
 0x113   : > { %v487_v19 = vmax.f32 %v443_v12, 0.0  ;;  %v446_v20 = vadd.f32 %v2433_v16, %v2726_v58  ;;  %2451 = vmatmul.mubr.msk.bf16.vlgmr.msra.gmra.mrb[0].mxu1 %vm544_vm2, %v498_v9  ;;  %v437_v21 = vpop.f32.mrb[7].mxu0  ;;  %v742_v9 = vld [vmem:[#allocation2 + $0x1a0] sm:$0xff]  ;;  %v743_v12 = vld [vmem:[#allocation2 + $0x1a8] sm:$0xff] }
 0x114   : > { %v485_v22 = vmax.f32 %v435_v15, 0.0  ;;  %v438_v23 = vadd.f32 %v2726_v58, %v437_v21  ;;  %1188 = vmatpush1.bf16.msra.mxu1 %v2338_v38  ;;  %v723_v38 = vld [vmem:[#allocation2 + $0x108] sm:$0xff]  ;;  %v2385_v11 = vcombine.high %v738_v8, %v742_v9  ;;  %v2384_v13 = vcombine.low %v738_v8, %v742_v9  ;;  %v746_v15 = vld [vmem:[#allocation2 + $0x1c0] sm:$0xff]  ;;  %v716_v9 = vld [vmem:[#allocation2 + $0xd0] sm:$0xff] }
 0x115   : > { %v488_v25 = vmax.f32 %v446_v20, 0.0  ;;  %1189 = vmatprep.subr.bf16.mxu1 %v2347_v14  ;;  %v2371_v48 = vcombine.high %v723_v38, %v727_v40  ;;  %v2370_v55 = vcombine.low %v723_v38, %v727_v40  ;;  %v2386_v14 = vcombine.low %v739_v10, %v743_v12  ;;  %v750_v16 = vld [vmem:[#allocation2 + $0x1e0] sm:$0xff] }
 0x116   : > { %v486_v27 = vmax.f32 %v438_v23, 0.0  ;;  %1086 = vmatprep.subr.bf16.mxu0 %v2385_v11  ;;  %v2393_v18 = vcombine.high %v746_v15, %v750_v16  ;;  %v2392_v20 = vcombine.low %v746_v15, %v750_v16  ;;  %v2570_v23 = vmov 0   ;;  %v720_v11 = vld [vmem:[#allocation2 + $0xf0] sm:$0xff] }
 0x117   : > { %v500_v30 = vpack.c.bf16 %v488_v25, %v487_v19  ;;  %1087 = vmatpush1.bf16.msra.mxu0 %v2384_v13  ;;  %v751_v19 = vld [vmem:[#allocation2 + $0x1e8] sm:$0xff]  ;;  %1106 = vmatprep.mubr.bf16.mxu0 %v2570_v23  ;;  %v696_v25 = vld [vmem:[#allocation2 + $0x30] sm:$0xff]  ;;  %v721_v13 = vld [vmem:[#allocation2 + $0xf8] sm:$0xff] }
 0x118   : > { %v499_v31 = vpack.c.bf16 %v486_v27, %v485_v22  ;;  %v2436_v33 = vpop.f32.mrb[8].mxu0  ;;  %1190 = vmatpush1.bf16.msra.mxu1 %v2346_v24  ;;  %v2394_v21 = vcombine.low %v747_v17, %v751_v19  ;;  %v2395_v22 = vcombine.high %v747_v17, %v751_v19  ;;  %1088 = vmatprep.subr.bf16.mxu0 %v2393_v18  ;;  %v692_v24 = vld [vmem:[#allocation2 + $0x10] sm:$0xff] }
 0x119   : > { %v459_v36 = vadd.f32 %v2436_v33, %v2726_v58  ;;  %v450_v37 = vpop.f32.mrb[9].mxu0  ;;  %1191 = vmatprep.subr.bf16.mxu1 %v2355_v26  ;;  %v693_v26 = vld [vmem:[#allocation2 + $0x18] sm:$0xff]  ;;  %v2340_v27 = vcombine.low %v692_v24, %v696_v25  ;;  %v2341_v28 = vcombine.high %v692_v24, %v696_v25  ;;  %v2760_v33 = vld [vmem:[%s2884_s4] ss:$0 sm:$0xff] }
 0x11a   : > { %2454 = vmatprep.mubr.msk.bf16.mxu1 %vm544_vm2, %v499_v31  ;;  %v451_v32 = vadd.f32 %v2726_v58, %v450_v37  ;;  %v2437_v35 = vpop.f32.mrb[10].mxu0  ;;  %v2343_v31 = vcombine.high %v693_v26, %v697_v29 }
 0x11b   : > { %2455 = vmatmul.mubr.msk.bf16.gmra.mrb[4].mxu1 %vm544_vm2, %v500_v30  ;;  %v491_v41 = vmax.f32 %v459_v36, 0.0  ;;  %v462_v42 = vadd.f32 %v2437_v35, %v2726_v58  ;;  %v453_v43 = vpop.f32.mrb[11].mxu0  ;;  %1089 = vmatpush1.bf16.msra.mxu0 %v2392_v20  ;;  %v2342_v30 = vcombine.low %v693_v26, %v697_v29  ;;  %v2365_v20 = vcombine.high %v716_v9, %v720_v11  ;;  %v728_v26 = vld [vmem:[#allocation2 + $0x130] sm:$0xff] }
 0x11c   : > { %v489_v44 = vmax.f32 %v451_v32, 0.0  ;;  %v454_v45 = vadd.f32 %v2726_v58, %v453_v43  ;;  %1192 = vmatpush1.bf16.msra.mxu1 %v2354_v34  ;;  %1300 = vmatprep.subr.bf16.mxu0 %v2341_v28  ;;  %v700_v43 = vld [vmem:[#allocation2 + $0x50] sm:$0xff]  ;;  %v729_v28 = vld [vmem:[#allocation2 + $0x138] sm:$0xff] }
 0x11d   : > { %v492_v47 = vmax.f32 %v462_v42, 0.0  ;;  %1193 = vmatprep.subr.bf16.mxu1 %v2363_v39 }
 0x11e   : > { %v490_v49 = vmax.f32 %v454_v45, 0.0 }
 0x11f   : > { %v502_v52 = vpack.c.bf16 %v492_v47, %v491_v41  ;;  %v701_v47 = vld [vmem:[#allocation2 + $0x58] sm:$0xff] }
 0x120   : > { %v501_v53 = vpack.c.bf16 %v490_v49, %v489_v44  ;;  %v2440_v54 = vpop.f32.mrb[12].mxu0  ;;  %1194 = vmatpush1.bf16.msra.mxu1 %v2362_v46  ;;  %v704_v46 = vld [vmem:[#allocation2 + $0x70] sm:$0xff] }
 0x121   : > { %v475_v56 = vadd.f32 %v2440_v54, %v2726_v58  ;;  %v466_v57 = vpop.f32.mrb[13].mxu0  ;;  %1195 = vmatprep.subr.bf16.mxu1 %v2371_v48  ;;  %v705_v48 = vld [vmem:[#allocation2 + $0x78] sm:$0xff] }
 0x122   : > { %2458 = vmatprep.mubr.msk.bf16.mxu1 %vm544_vm2, %v501_v53  ;;  %v467_v60 = vadd.f32 %v2726_v58, %v466_v57  ;;  %v2441_v61 = vpop.f32.mrb[14].mxu0  ;;  %v712_v57 = vld [vmem:[#allocation2 + $0xb0] sm:$0xff] }
 0x123   : > { %2459 = vmatmul.mubr.msk.bf16.gmra.mrb[8].mxu1 %vm544_vm2, %v502_v52  ;;  %v495_v62 = vmax.f32 %v475_v56, 0.0  ;;  %v478_v63 = vadd.f32 %v2441_v61, %v2726_v58  ;;  %v469_v0 = vpop.f32.mrb[15].mxu0  ;;  %v708_v52 = vld [vmem:[#allocation2 + $0x90] sm:$0xff]  ;;  %v2351_v56 = vcombine.high %v701_v47, %v705_v48 }
 0x124   : > { %v493_v1 = vmax.f32 %v467_v60, 0.0  ;;  %v470_v2 = vadd.f32 %v2726_v58, %v469_v0  ;;  %1196 = vmatpush1.bf16.msra.mxu1 %v2370_v55  ;;  %v2387_v58 = vcombine.high %v739_v10, %v743_v12  ;;  %v2349_v55 = vcombine.high %v700_v43, %v704_v46  ;;  %v713_v60 = vld [vmem:[#allocation2 + $0xb8] sm:$0xff] }
 0x125   : > { %v496_v4 = vmax.f32 %v478_v63, 0.0  ;;  %1197 = vmatprep.subr.bf16.mxu1 %v2379_v59  ;;  %v709_v59 = vld [vmem:[#allocation2 + $0x98] sm:$0xff]  ;;  %v2356_v16 = vcombine.low %v708_v52, %v712_v57 }
 0x126   : > { %v494_v5 = vmax.f32 %v470_v2, 0.0  ;;  %v2348_v2 = vcombine.low %v700_v43, %v704_v46  ;;  %v717_v12 = vld [vmem:[#allocation2 + $0xd8] sm:$0xff]  ;;  %v2358_v17 = vcombine.low %v709_v59, %v713_v60 }
 0x127   : > { %v504_v6 = vpack.c.bf16 %v496_v4, %v495_v62  ;;  %v733_v43 = vld [vmem:[#allocation2 + $0x158] sm:$0xff] }
 0x128   : > { %v503_v7 = vpack.c.bf16 %v494_v5, %v493_v1  ;;  %1198 = vmatpush1.bf16.msra.mxu1 %v2378_v3  ;;  %v2350_v3 = vcombine.low %v701_v47, %v705_v48 }
 0x129   : > { %1199 = vmatprep.subr.bf16.mxu1 %v2387_v58 }
 0x12a   : > { %2462 = vmatprep.mubr.msk.bf16.mxu1 %vm544_vm2, %v503_v7  ;;  %v2359_v7 = vcombine.high %v709_v59, %v713_v60  ;;  %v744_v60 = vld [vmem:[#allocation2 + $0x1b0] sm:$0xff] }
 0x12b   : > { %2463 = vmatmul.mubr.msk.bf16.gmra.mrb[12].mxu1 %vm544_vm2, %v504_v6  ;;  %v2357_v6 = vcombine.high %v708_v52, %v712_v57 }
 0x12c   : > { %1200 = vmatpush1.bf16.msra.mxu1 %v2386_v14  ;;  %1219 = vmatprep.mubr.bf16.mxu1 %v2570_v23 }
 0x12d   : > { %1201 = vmatprep.subr.bf16.mxu1 %v2395_v22  ;;  %v724_v22 = vld [vmem:[#allocation2 + $0x110] sm:$0xff] }
 0x12e   : > { %v2372_v48 = vcombine.low %v724_v22, %v728_v26 }
 0x130   : > { %1202 = vmatpush1.bf16.msra.mxu1 %v2394_v21  ;;  %v2367_v21 = vcombine.high %v717_v12, %v721_v13 }
 0x131   : > { %1413 = vmatprep.subr.bf16.mxu1 %v2343_v31 }
 0x1e6   : > { %v2452_v34 = vpop.f32.mrb[0].mxu1 }
 0x1e7   : > { %v612_v36 = vadd.f32 %v2452_v34, %v2760_v33  ;;  %v603_v37 = vpop.f32.mrb[1].mxu1 }
 0x1e8   : > { %v604_v39 = vadd.f32 %v2760_v33, %v603_v37  ;;  %v2453_v32 = vpop.f32.mrb[2].mxu1  ;;  %v2364_v37 = vcombine.low %v716_v9, %v720_v11  ;;  %v748_v9 = vld [vmem:[#allocation2 + $0x1d0] sm:$0xff] }
 0x1e9   : > { %v615_v35 = vadd.f32 %v2453_v32, %v2760_v33  ;;  %v606_v38 = vpop.f32.mrb[3].mxu1  ;;  %v668_v41 = vmax.f32 %v612_v36, 0.0  ;;  %v752_v11 = vld [vmem:[#allocation2 + $0x1f0] sm:$0xff] }
 0x1ea   : > { %v607_v40 = vadd.f32 %v2760_v33, %v606_v38  ;;  %v666_v44 = vmax.f32 %v604_v39, 0.0  ;;  %v2366_v39 = vcombine.low %v717_v12, %v721_v13  ;;  %v749_v12 = vld [vmem:[#allocation2 + $0x1d8] sm:$0xff] }
 0x1eb   : > { %v669_v42 = vmax.f32 %v615_v35, 0.0  ;;  %v2373_v35 = vcombine.high %v724_v22, %v728_v26  ;;  %v753_v13 = vld [vmem:[#allocation2 + $0x1f8] sm:$0xff] }
 0x1ec   : > { %v667_v45 = vmax.f32 %v607_v40, 0.0  ;;  %v732_v40 = vld [vmem:[#allocation2 + $0x150] sm:$0xff] }
 0x1ed   : > { %v2766_v49 = vpack.c.bf16 %v669_v42, %v668_v41  ;;  %v736_v42 = vld [vmem:[#allocation2 + $0x170] sm:$0xff] }
 0x1ee   : > { %v2768_v50 = vpack.c.bf16 %v667_v45, %v666_v44  ;;  %v2456_v51 = vpop.f32.mrb[4].mxu1  ;;  %v737_v44 = vld [vmem:[#allocation2 + $0x178] sm:$0xff] }
 0x1ef   : > { %v628_v53 = vadd.f32 %v2456_v51, %v2760_v33  ;;  %v619_v54 = vpop.f32.mrb[5].mxu1 }
 0x1f0   : > { %v620_v61 = vadd.f32 %v2760_v33, %v619_v54  ;;  %1107 = vmatmul.mubr.bf16.vlgmr.msra.gmra.mrb[16].mxu0 %v2768_v50  ;;  %1220 = vmatmul.mubr.bf16.vlgmr.msra.gmra.mrb[16].mxu1 %v2768_v50  ;;  %v2457_v62 = vpop.f32.mrb[6].mxu1  ;;  %v2381_v54 = vcombine.high %v732_v40, %v736_v42 }
 0x1f1   : > { %v672_v63 = vmax.f32 %v628_v53, 0.0  ;;  %1301 = vmatpush1.bf16.msra.mxu0 %v2340_v27  ;;  %1414 = vmatpush1.bf16.msra.mxu1 %v2342_v30  ;;  %v631_v0 = vadd.f32 %v2457_v62, %v2760_v33  ;;  %v622_v1 = vpop.f32.mrb[7].mxu1  ;;  %v725_v27 = vld [vmem:[#allocation2 + $0x118] sm:$0xff] }
 0x1f2   : > { %v670_v4 = vmax.f32 %v620_v61, 0.0  ;;  %v623_v5 = vadd.f32 %v2760_v33, %v622_v1  ;;  %1116 = vmatprep.mubr.bf16.mxu0 %v2570_v23  ;;  %1229 = vmatprep.mubr.bf16.mxu1 %v2570_v23  ;;  %v2375_v38 = vcombine.high %v725_v27, %v729_v28  ;;  %v2374_v51 = vcombine.low %v725_v27, %v729_v28  ;;  %v741_v61 = vld [vmem:[#allocation2 + $0x198] sm:$0xff] }
 0x1f3   : > { %v673_v8 = vmax.f32 %v631_v0, 0.0  ;;  %1302 = vmatprep.subr.bf16.mxu0 %v2349_v55  ;;  %1415 = vmatprep.subr.bf16.mxu1 %v2351_v56  ;;  %v2383_v55 = vcombine.high %v733_v43, %v737_v44  ;;  %v740_v56 = vld [vmem:[#allocation2 + $0x190] sm:$0xff]  ;;  %v745_v62 = vld [vmem:[#allocation2 + $0x1b8] sm:$0xff] }
 0x1f4   : > { %v671_v10 = vmax.f32 %v623_v5, 0.0  ;;  %v2382_v5 = vcombine.low %v733_v43, %v737_v44 }
 0x1f5   : > { %v2778_v14 = vpack.c.bf16 %v673_v8, %v672_v63  ;;  %1303 = vmatpush1.bf16.msra.mxu0 %v2348_v2  ;;  %1416 = vmatpush1.bf16.msra.mxu1 %v2350_v3  ;;  %v2391_v8 = vcombine.high %v741_v61, %v745_v62 }
 0x1f6   : > { %v2780_v58 = vpack.c.bf16 %v671_v10, %v670_v4  ;;  %v2460_v15 = vpop.f32.mrb[8].mxu1  ;;  %1304 = vmatprep.subr.bf16.mxu0 %v2357_v6  ;;  %1417 = vmatprep.subr.bf16.mxu1 %v2359_v7  ;;  %v2380_v4 = vcombine.low %v732_v40, %v736_v42  ;;  %v2389_v7 = vcombine.high %v740_v56, %v744_v60  ;;  %v2160_v40 = vlaneseq }
 0x1f7   : > { %v644_v18 = vadd.f32 %v2460_v15, %v2760_v33  ;;  %v635_v19 = vpop.f32.mrb[9].mxu1 }
 0x1f8   : > { %1117 = vmatmul.mubr.bf16.gmra.mrb[20].mxu0 %v2766_v49  ;;  %1230 = vmatmul.mubr.bf16.gmra.mrb[20].mxu1 %v2766_v49  ;;  %v636_v24 = vadd.f32 %v2760_v33, %v635_v19  ;;  %v2461_v25 = vpop.f32.mrb[10].mxu1  ;;  %v2399_v19 = vcombine.high %v749_v12, %v753_v13 }
 0x1f9   : > { %v676_v29 = vmax.f32 %v644_v18, 0.0  ;;  %1126 = vmatprep.mubr.bf16.mxu0 %v2570_v23  ;;  %1239 = vmatprep.mubr.bf16.mxu1 %v2570_v23  ;;  %v647_v30 = vadd.f32 %v2461_v25, %v2760_v33  ;;  %v638_v31 = vpop.f32.mrb[11].mxu1  ;;  %v2390_v18 = vcombine.low %v741_v61, %v745_v62  ;;  %v2161_v61 = vshrl.u32 %v2160_v40, 7 }
 0x1fa   : > { %v674_v34 = vmax.f32 %v636_v24, 0.0  ;;  %1305 = vmatpush1.bf16.msra.mxu0 %v2356_v16  ;;  %1418 = vmatpush1.bf16.msra.mxu1 %v2358_v17  ;;  %v639_v36 = vadd.f32 %v2760_v33, %v638_v31  ;;  %v2388_v17 = vcombine.low %v740_v56, %v744_v60 }
 0x1fb   : > { %v677_v32 = vmax.f32 %v647_v30, 0.0  ;;  %1306 = vmatprep.subr.bf16.mxu0 %v2365_v20  ;;  %1419 = vmatprep.subr.bf16.mxu1 %v2367_v21  ;;  %v2396_v20 = vcombine.low %v748_v9, %v752_v11  ;;  %v2398_v21 = vcombine.low %v749_v12, %v753_v13 }
 0x1fc   : > { %v675_v41 = vmax.f32 %v639_v36, 0.0 }
 0x1fd   : > { %v2790_v45 = vpack.c.bf16 %v677_v32, %v676_v29 }
 0x1fe   : > { %v2792_v46 = vpack.c.bf16 %v675_v41, %v674_v34  ;;  %1307 = vmatpush1.bf16.msra.mxu0 %v2364_v37  ;;  %1420 = vmatpush1.bf16.msra.mxu1 %v2366_v39  ;;  %v2464_v47 = vpop.f32.mrb[12].mxu1 }
 0x1ff   : > { %v660_v52 = vadd.f32 %v2464_v47, %v2760_v33  ;;  %1308 = vmatprep.subr.bf16.mxu0 %v2373_v35  ;;  %1421 = vmatprep.subr.bf16.mxu1 %v2375_v38  ;;  %v651_v53 = vpop.f32.mrb[13].mxu1  ;;  %v2571_v35 = vmov 1966171168  }
 0x200   : > { %1127 = vmatmul.mubr.bf16.gmra.mrb[24].mxu0 %v2780_v58  ;;  %1240 = vmatmul.mubr.bf16.gmra.mrb[24].mxu1 %v2780_v58  ;;  %v652_v57 = vadd.f32 %v2760_v33, %v651_v53  ;;  %v2465_v59 = vpop.f32.mrb[14].mxu1  ;;  %v2158_v38 = vunpack.c.l.s4 %v2571_v35 }
 0x201   : > { %1136 = vmatprep.mubr.bf16.mxu0 %v2570_v23  ;;  %1249 = vmatprep.mubr.bf16.mxu1 %v2570_v23  ;;  %v680_v63 = vmax.f32 %v660_v52, 0.0  ;;  %v663_v0 = vadd.f32 %v2465_v59, %v2760_v33  ;;  %v654_v1 = vpop.f32.mrb[15].mxu1 }
 0x202   : > { %v678_v2 = vmax.f32 %v652_v57, 0.0  ;;  %1309 = vmatpush1.bf16.msra.mxu0 %v2372_v48  ;;  %1422 = vmatpush1.bf16.msra.mxu1 %v2374_v51  ;;  %v655_v3 = vadd.f32 %v2760_v33, %v654_v1  ;;  %v2397_v33 = vcombine.high %v748_v9, %v752_v11  ;;  %v2159_v60 = vunpack.c.0.s8 %v2158_v38 }
 0x203   : > { %v681_v6 = vmax.f32 %v663_v0, 0.0  ;;  %1310 = vmatprep.subr.bf16.mxu0 %v2381_v54  ;;  %1423 = vmatprep.subr.bf16.mxu1 %v2383_v55 }
 0x204   : > { %v679_v10 = vmax.f32 %v655_v3, 0.0 }
 0x205   : > { %v2802_v15 = vpack.c.bf16 %v681_v6, %v680_v63  ;;  %v2850_v6 = vsub.s32 %v2159_v60, %v2161_v61 }
 0x206   : > { %v688_v16 = vpack.c.bf16 %v679_v10, %v678_v2  ;;  %1311 = vmatpush1.bf16.msra.mxu0 %v2380_v4  ;;  %1424 = vmatpush1.bf16.msra.mxu1 %v2382_v5 }
 0x207   : > { %1312 = vmatprep.subr.bf16.mxu0 %v2389_v7  ;;  %1425 = vmatprep.subr.bf16.mxu1 %v2391_v8 }
 0x208   : > { %1137 = vmatmul.mubr.bf16.gmra.mrb[28].mxu0 %v2778_v14  ;;  %1250 = vmatmul.mubr.bf16.gmra.mrb[28].mxu1 %v2778_v14 }
 0x209   : > { %1146 = vmatprep.mubr.bf16.mxu0 %v2570_v23  ;;  %1259 = vmatprep.mubr.bf16.mxu1 %v2570_v23 }
 0x20a   : > { %1313 = vmatpush1.bf16.msra.mxu0 %v2388_v17  ;;  %1426 = vmatpush1.bf16.msra.mxu1 %v2390_v18 }
 0x20b   : > { %1314 = vmatprep.subr.bf16.mxu0 %v2397_v33  ;;  %1427 = vmatprep.subr.bf16.mxu1 %v2399_v19 }
 0x20e   : > { %1315 = vmatpush1.bf16.msra.mxu0 %v2396_v20  ;;  %1428 = vmatpush1.bf16.msra.mxu1 %v2398_v21 }
 0x210   : > { %1147 = vmatmul.mubr.bf16.gmra.mrb[32].mxu0 %v2792_v46  ;;  %1260 = vmatmul.mubr.bf16.gmra.mrb[32].mxu1 %v2792_v46 }
 0x211   : > { %1156 = vmatprep.mubr.bf16.mxu0 %v2570_v23  ;;  %1269 = vmatprep.mubr.bf16.mxu1 %v2570_v23 }
 0x218   : > { %1157 = vmatmul.mubr.bf16.gmra.mrb[36].mxu0 %v2790_v45  ;;  %1270 = vmatmul.mubr.bf16.gmra.mrb[36].mxu1 %v2790_v45 }
 0x219   : > { %1166 = vmatprep.mubr.bf16.mxu0 %v2570_v23  ;;  %1279 = vmatprep.mubr.bf16.mxu1 %v2570_v23 }
 0x220   : > { %1167 = vmatmul.mubr.bf16.gmra.mrb[40].mxu0 %v688_v16  ;;  %1280 = vmatmul.mubr.bf16.gmra.mrb[40].mxu1 %v688_v16 }
 0x221   : > { %1176 = vmatprep.mubr.bf16.mxu0 %v2570_v23  ;;  %1289 = vmatprep.mubr.bf16.mxu1 %v2570_v23 }
 0x228   : > { %1177 = vmatmul.mubr.bf16.gmra.mrb[44].mxu0 %v2802_v15  ;;  %1290 = vmatmul.mubr.bf16.gmra.mrb[44].mxu1 %v2802_v15 }
 0x229   : > { %1332 = vmatprep.mubr.bf16.mxu0 %v2570_v23  ;;  %1445 = vmatprep.mubr.bf16.mxu1 %v2570_v23 }
 0x230   : > { %1333 = vmatmul.mubr.bf16.vlgmr.msra.gmra.mrb[48].mxu0 %v2768_v50  ;;  %1446 = vmatmul.mubr.bf16.vlgmr.msra.gmra.mrb[48].mxu1 %v2768_v50 }
 0x231   : > { %1342 = vmatprep.mubr.bf16.mxu0 %v2570_v23  ;;  %1455 = vmatprep.mubr.bf16.mxu1 %v2570_v23 }
 0x238   : > { %1343 = vmatmul.mubr.bf16.gmra.mrb[52].mxu0 %v2766_v49  ;;  %1456 = vmatmul.mubr.bf16.gmra.mrb[52].mxu1 %v2766_v49 }
 0x239   : > { %1352 = vmatprep.mubr.bf16.mxu0 %v2570_v23  ;;  %1465 = vmatprep.mubr.bf16.mxu1 %v2570_v23 }
 0x240   : > { %1353 = vmatmul.mubr.bf16.gmra.mrb[56].mxu0 %v2780_v58  ;;  %1466 = vmatmul.mubr.bf16.gmra.mrb[56].mxu1 %v2780_v58 }
 0x241   : > { %1362 = vmatprep.mubr.bf16.mxu0 %v2570_v23  ;;  %1475 = vmatprep.mubr.bf16.mxu1 %v2570_v23 }
 0x248   : > { %1363 = vmatmul.mubr.bf16.gmra.mrb[60].mxu0 %v2778_v14  ;;  %1476 = vmatmul.mubr.bf16.gmra.mrb[60].mxu1 %v2778_v14 }
 0x249   : > { %1372 = vmatprep.mubr.bf16.mxu0 %v2570_v23  ;;  %1485 = vmatprep.mubr.bf16.mxu1 %v2570_v23 }
 0x250   : > { %1373 = vmatmul.mubr.bf16.gmra.mrb[64].mxu0 %v2792_v46  ;;  %1486 = vmatmul.mubr.bf16.gmra.mrb[64].mxu1 %v2792_v46 }
 0x251   : > { %1382 = vmatprep.mubr.bf16.mxu0 %v2570_v23  ;;  %1495 = vmatprep.mubr.bf16.mxu1 %v2570_v23 }
 0x258   : > { %1383 = vmatmul.mubr.bf16.gmra.mrb[68].mxu0 %v2790_v45  ;;  %1496 = vmatmul.mubr.bf16.gmra.mrb[68].mxu1 %v2790_v45 }
 0x259   : > { %1392 = vmatprep.mubr.bf16.mxu0 %v2570_v23  ;;  %1505 = vmatprep.mubr.bf16.mxu1 %v2570_v23 }
 0x260   : > { %1393 = vmatmul.mubr.bf16.gmra.mrb[72].mxu0 %v688_v16  ;;  %1506 = vmatmul.mubr.bf16.gmra.mrb[72].mxu1 %v688_v16 }
 0x261   : > { %1402 = vmatprep.mubr.bf16.mxu0 %v2570_v23  ;;  %1515 = vmatprep.mubr.bf16.mxu1 %v2570_v23 }
 0x268   : > { %1403 = vmatmul.mubr.bf16.gmra.mrb[76].mxu0 %v2802_v15  ;;  %1516 = vmatmul.mubr.bf16.gmra.mrb[76].mxu1 %v2802_v15 }
 0x2c3   : > { %v1108_v49 = vpop.f32.mrb[16].mxu0  ;;  %v1221_v50 = vpop.f32.mrb[16].mxu1 }
 0x2c4   : > { %v1110_v14 = vpop.f32.mrb[17].mxu0  ;;  %v1223_v58 = vpop.f32.mrb[17].mxu1 }
 0x2c5   : > { %v1112_v22 = vpop.f32.mrb[18].mxu0  ;;  %v1225_v24 = vpop.f32.mrb[18].mxu1 }
 0x2c6   : > { %v1977_v25 = vmax.f32 %v1108_v49, %v1112_v22  ;;  %v2019_v26 = vmax.f32 %v1221_v50, %v1225_v24  ;;  %v1114_v27 = vpop.f32.mrb[19].mxu0  ;;  %v1227_v28 = vpop.f32.mrb[19].mxu1 }
 0x2c7   : > { %v1998_v29 = vmax.f32 %v1110_v14, %v1114_v27  ;;  %v2040_v30 = vmax.f32 %v1223_v58, %v1227_v28 }
 0x2c8   : > { %v1992_v31 = vrot.slane %v1977_v25, 4  ;;  %v2034_v34 = vrot.slane %v2019_v26, 4 }
 0x2c9   : > { %v2013_v36 = vrot.slane %v1998_v29, 4  ;;  %v2055_v23 = vrot.slane %v2040_v30, 4 }
 0x2ca   : > { %v1993_v37 = vmax.f32 %v1977_v25, %v1992_v31  ;;  %v2035_v39 = vmax.f32 %v2019_v26, %v2034_v34 }
 0x2cb   : > { %v2014_v32 = vmax.f32 %v1998_v29, %v2013_v36  ;;  %v2056_v41 = vmax.f32 %v2040_v30, %v2055_v23  ;;  %v1118_v42 = vpop.f32.mrb[20].mxu0  ;;  %v1231_v43 = vpop.f32.mrb[20].mxu1 }
 0x2cc   : > { %v1994_v44 = vrot.slane %v1993_v37, 2  ;;  %v2036_v45 = vrot.slane %v2035_v39, 2  ;;  %v1120_v46 = vpop.f32.mrb[21].mxu0  ;;  %v1233_v47 = vpop.f32.mrb[21].mxu1 }
 0x2cd   : > { %v2015_v48 = vrot.slane %v2014_v32, 2  ;;  %v2057_v51 = vrot.slane %v2056_v41, 2  ;;  %v1122_v52 = vpop.f32.mrb[22].mxu0  ;;  %v1235_v53 = vpop.f32.mrb[22].mxu1 }
 0x2ce   : > { %v1995_v54 = vmax.f32 %v1993_v37, %v1994_v44  ;;  %v2037_v55 = vmax.f32 %v2035_v39, %v2036_v45  ;;  %v1124_v56 = vpop.f32.mrb[23].mxu0  ;;  %v1237_v57 = vpop.f32.mrb[23].mxu1 }
 0x2cf   : > { %v2016_v59 = vmax.f32 %v2014_v32, %v2015_v48  ;;  %v2058_v62 = vmax.f32 %v2056_v41, %v2057_v51 }
 0x2d0   : > { %v1996_v63 = vrot.slane %v1995_v54, 1  ;;  %v2038_v0 = vrot.slane %v2037_v55, 1 }
 0x2d1   : > { %v2017_v1 = vrot.slane %v2016_v59, 1  ;;  %v2059_v2 = vrot.slane %v2058_v62, 1 }
 0x2d2   : > { %v1997_v3 = vmax.f32 %v1995_v54, %v1996_v63  ;;  %v2039_v4 = vmax.f32 %v2037_v55, %v2038_v0 }
 0x2d3   : > { %v2018_v5 = vmax.f32 %v2016_v59, %v2017_v1  ;;  %v2060_v7 = vmax.f32 %v2058_v62, %v2059_v2  ;;  %v1128_v8 = vpop.f32.mrb[24].mxu0  ;;  %v1241_v9 = vpop.f32.mrb[24].mxu1 }
 0x2d4   : > { %v1130_v10 = vpop.f32.mrb[25].mxu0  ;;  %v1243_v11 = vpop.f32.mrb[25].mxu1 }
 0x2d5   : > { %v2153_v12 = vcombine.low %v1997_v3, %v2018_v5  ;;  %v2154_v13 = vcombine.low %v2039_v4, %v2060_v7  ;;  %v1132_v15 = vpop.f32.mrb[26].mxu0  ;;  %v1245_v16 = vpop.f32.mrb[26].mxu1 }
 0x2d6   : > { %v1134_v17 = vpop.f32.mrb[27].mxu0  ;;  %v1247_v18 = vpop.f32.mrb[27].mxu1 }
 0x2d7   : > { %v2853_v33 = vrot.slane %v2153_v12, %v2850_v6  ;;  %v2856_v19 = vrot.slane %v2154_v13, %v2850_v6 }
 0x2d9   : > { %v2185_v20 = vcombine.low %v2853_v33, %v2856_v19 }
 0x2db   : > { %v1138_v21 = vpop.f32.mrb[28].mxu0  ;;  %v1251_v49 = vpop.f32.mrb[28].mxu1 }
 0x2dc   : > { %v1140_v50 = vpop.f32.mrb[29].mxu0  ;;  %v1253_v14 = vpop.f32.mrb[29].mxu1 }
 0x2dd   : > { %v1142_v58 = vpop.f32.mrb[30].mxu0  ;;  %v1255_v22 = vpop.f32.mrb[30].mxu1 }
 0x2de   : > { %v1144_v24 = vpop.f32.mrb[31].mxu0  ;;  %v1257_v25 = vpop.f32.mrb[31].mxu1 }
 0x2e3   : > { %v1148_v26 = vpop.f32.mrb[32].mxu0  ;;  %v1261_v27 = vpop.f32.mrb[32].mxu1 }
 0x2e4   : > { %v1150_v28 = vpop.f32.mrb[33].mxu0  ;;  %v1263_v29 = vpop.f32.mrb[33].mxu1 }
 0x2e5   : > { %v1152_v30 = vpop.f32.mrb[34].mxu0  ;;  %v1265_v31 = vpop.f32.mrb[34].mxu1 }
 0x2e6   : > { %v1154_v34 = vpop.f32.mrb[35].mxu0  ;;  %v1267_v36 = vpop.f32.mrb[35].mxu1 }
 0x2eb   : > { %v1158_v23 = vpop.f32.mrb[36].mxu0  ;;  %v1271_v37 = vpop.f32.mrb[36].mxu1 }
 0x2ec   : > { %v1160_v39 = vpop.f32.mrb[37].mxu0  ;;  %v1273_v32 = vpop.f32.mrb[37].mxu1 }
 0x2ed   : > { %v1162_v35 = vpop.f32.mrb[38].mxu0  ;;  %v1275_v38 = vpop.f32.mrb[38].mxu1 }
 0x2ee   : > { %v1164_v40 = vpop.f32.mrb[39].mxu0  ;;  %v1277_v41 = vpop.f32.mrb[39].mxu1 }
 0x2f3   : > { %v1168_v42 = vpop.f32.mrb[40].mxu0  ;;  %v1281_v43 = vpop.f32.mrb[40].mxu1 }
 0x2f4   : > { %v1170_v44 = vpop.f32.mrb[41].mxu0  ;;  %v1283_v45 = vpop.f32.mrb[41].mxu1 }
 0x2f5   : > { %v1172_v46 = vpop.f32.mrb[42].mxu0  ;;  %v1285_v47 = vpop.f32.mrb[42].mxu1 }
 0x2f6   : > { %v1174_v48 = vpop.f32.mrb[43].mxu0  ;;  %v1287_v51 = vpop.f32.mrb[43].mxu1 }
 0x2fb   : > { %v1178_v52 = vpop.f32.mrb[44].mxu0  ;;  %v1291_v53 = vpop.f32.mrb[44].mxu1 }
 0x2fc   : > { %v1180_v54 = vpop.f32.mrb[45].mxu0  ;;  %v1293_v55 = vpop.f32.mrb[45].mxu1 }
 0x2fd   : > { %v1182_v56 = vpop.f32.mrb[46].mxu0  ;;  %v1295_v57 = vpop.f32.mrb[46].mxu1 }
 0x2fe   : > { %v1184_v59 = vpop.f32.mrb[47].mxu0  ;;  %v1297_v60 = vpop.f32.mrb[47].mxu1  ;;  %v2193_v57 = vrot.slane %v2185_v20, %v2850_v6 }
 0x303   : > { %v1334_v61 = vpop.f32.mrb[48].mxu0  ;;  %v1447_v62 = vpop.f32.mrb[48].mxu1 }
 0x304   : > { %v1336_v63 = vpop.f32.mrb[49].mxu0  ;;  %v1449_v0 = vpop.f32.mrb[49].mxu1 }
 0x305   : > { %v1338_v1 = vpop.f32.mrb[50].mxu0  ;;  %v1451_v2 = vpop.f32.mrb[50].mxu1 }
 0x306   : > { %v2061_v3 = vmax.f32 %v1334_v61, %v1338_v1  ;;  %v2103_v4 = vmax.f32 %v1447_v62, %v1451_v2  ;;  %v1340_v5 = vpop.f32.mrb[51].mxu0  ;;  %v1453_v7 = vpop.f32.mrb[51].mxu1 }
 0x307   : > { %v2082_v8 = vmax.f32 %v1336_v63, %v1340_v5  ;;  %v2124_v9 = vmax.f32 %v1449_v0, %v1453_v7 }
 0x308   : > { %v2076_v10 = vrot.slane %v2061_v3, 4  ;;  %v2118_v11 = vrot.slane %v2103_v4, 4 }
 0x309   : > { %v2097_v12 = vrot.slane %v2082_v8, 4  ;;  %v2139_v13 = vrot.slane %v2124_v9, 4 }
 0x30a   : > { %v2077_v15 = vmax.f32 %v2061_v3, %v2076_v10  ;;  %v2119_v16 = vmax.f32 %v2103_v4, %v2118_v11 }
 0x30b   : > { %v2098_v17 = vmax.f32 %v2082_v8, %v2097_v12  ;;  %v2140_v18 = vmax.f32 %v2124_v9, %v2139_v13  ;;  %v1344_v21 = vpop.f32.mrb[52].mxu0  ;;  %v1457_v49 = vpop.f32.mrb[52].mxu1 }
 0x30c   : > { %v2078_v50 = vrot.slane %v2077_v15, 2  ;;  %v2120_v14 = vrot.slane %v2119_v16, 2  ;;  %v1346_v58 = vpop.f32.mrb[53].mxu0  ;;  %v1459_v22 = vpop.f32.mrb[53].mxu1 }
 0x30d   : > { %v2099_v24 = vrot.slane %v2098_v17, 2  ;;  %v2141_v25 = vrot.slane %v2140_v18, 2  ;;  %v1348_v26 = vpop.f32.mrb[54].mxu0  ;;  %v1461_v27 = vpop.f32.mrb[54].mxu1 }
 0x30e   : > { %v2079_v28 = vmax.f32 %v2077_v15, %v2078_v50  ;;  %v2121_v29 = vmax.f32 %v2119_v16, %v2120_v14  ;;  %v1350_v30 = vpop.f32.mrb[55].mxu0  ;;  %v1463_v31 = vpop.f32.mrb[55].mxu1 }
 0x30f   : > { %v2100_v34 = vmax.f32 %v2098_v17, %v2099_v24  ;;  %v2142_v36 = vmax.f32 %v2140_v18, %v2141_v25 }
 0x310   : > { %v2080_v23 = vrot.slane %v2079_v28, 1  ;;  %v2122_v37 = vrot.slane %v2121_v29, 1 }
 0x311   : > { %v2101_v39 = vrot.slane %v2100_v34, 1  ;;  %v2143_v32 = vrot.slane %v2142_v36, 1 }
 0x312   : > { %v2081_v35 = vmax.f32 %v2079_v28, %v2080_v23  ;;  %v2123_v38 = vmax.f32 %v2121_v29, %v2122_v37 }
 0x313   : > { %v2102_v40 = vmax.f32 %v2100_v34, %v2101_v39  ;;  %v2144_v41 = vmax.f32 %v2142_v36, %v2143_v32  ;;  %v1354_v42 = vpop.f32.mrb[56].mxu0  ;;  %v1467_v43 = vpop.f32.mrb[56].mxu1 }
 0x314   : > { %v1356_v44 = vpop.f32.mrb[57].mxu0  ;;  %v1469_v45 = vpop.f32.mrb[57].mxu1 }
 0x315   : > { %v2155_v46 = vcombine.low %v2081_v35, %v2102_v40  ;;  %v2156_v47 = vcombine.low %v2123_v38, %v2144_v41  ;;  %v1358_v48 = vpop.f32.mrb[58].mxu0  ;;  %v1471_v51 = vpop.f32.mrb[58].mxu1 }
 0x316   : > { %v1360_v52 = vpop.f32.mrb[59].mxu0  ;;  %v1473_v53 = vpop.f32.mrb[59].mxu1 }
 0x317   : > { %v2177_v54 = vrot.slane %v2155_v46, %v2850_v6  ;;  %v2184_v55 = vrot.slane %v2156_v47, %v2850_v6 }
 0x319   : > { %v2186_v56 = vcombine.low %v2177_v54, %v2184_v55 }
 0x31b   : > { %v2200_v59 = vrot.slane %v2186_v56, %v2850_v6  ;;  %v1364_v60 = vpop.f32.mrb[60].mxu0  ;;  %v1477_v61 = vpop.f32.mrb[60].mxu1 }
 0x31c   : > { %v1366_v62 = vpop.f32.mrb[61].mxu0  ;;  %v1479_v63 = vpop.f32.mrb[61].mxu1 }
 0x31d   : > { %v2201_v0 = vcombine.low %v2193_v57, %v2200_v59  ;;  %v1368_v1 = vpop.f32.mrb[62].mxu0  ;;  %v1481_v2 = vpop.f32.mrb[62].mxu1 }
 0x31e   : > { %v1370_v3 = vpop.f32.mrb[63].mxu0  ;;  %v1483_v4 = vpop.f32.mrb[63].mxu1 }
 0x31f   : > { %2204 = vst [vmem:[%s316_s20] sm:$0xff] %v2201_v0 }
 0x323   : > { %v1374_v5 = vpop.f32.mrb[64].mxu0  ;;  %v1487_v33 = vpop.f32.mrb[64].mxu1 }
 0x324   : > { %v1376_v19 = vpop.f32.mrb[65].mxu0  ;;  %v1489_v20 = vpop.f32.mrb[65].mxu1 }
 0x325   : > { %v1378_v7 = vpop.f32.mrb[66].mxu0  ;;  %v1491_v6 = vpop.f32.mrb[66].mxu1 }
 0x326   : > { %v1380_v8 = vpop.f32.mrb[67].mxu0  ;;  %v1493_v9 = vpop.f32.mrb[67].mxu1 }
 0x32b   : > { %v1384_v10 = vpop.f32.mrb[68].mxu0  ;;  %v1497_v11 = vpop.f32.mrb[68].mxu1 }
 0x32c   : > { %v1386_v12 = vpop.f32.mrb[69].mxu0  ;;  %v1499_v13 = vpop.f32.mrb[69].mxu1 }
 0x32d   : > { %v1388_v15 = vpop.f32.mrb[70].mxu0  ;;  %v1501_v16 = vpop.f32.mrb[70].mxu1 }
 0x32e   : > { %v1390_v17 = vpop.f32.mrb[71].mxu0  ;;  %v1503_v18 = vpop.f32.mrb[71].mxu1 }
 0x333   : > { %v1394_v21 = vpop.f32.mrb[72].mxu0  ;;  %v1507_v49 = vpop.f32.mrb[72].mxu1 }
 0x334   : > { %v1396_v50 = vpop.f32.mrb[73].mxu0  ;;  %v1509_v14 = vpop.f32.mrb[73].mxu1 }
 0x335   : > { %v1398_v58 = vpop.f32.mrb[74].mxu0  ;;  %v1511_v22 = vpop.f32.mrb[74].mxu1 }
 0x336   : > { %v1400_v24 = vpop.f32.mrb[75].mxu0  ;;  %v1513_v25 = vpop.f32.mrb[75].mxu1 }
 0x33b   : > { %v1404_v26 = vpop.f32.mrb[76].mxu0  ;;  %v1517_v27 = vpop.f32.mrb[76].mxu1 }
 0x33c   : > { %v1406_v28 = vpop.f32.mrb[77].mxu0  ;;  %v1519_v29 = vpop.f32.mrb[77].mxu1 }
 0x33d   : > { %v1408_v30 = vpop.f32.mrb[78].mxu0  ;;  %v1521_v31 = vpop.f32.mrb[78].mxu1 }
 0x33e   : > { %v1410_v34 = vpop.f32.mrb[79].mxu0  ;;  %v1523_v36 = vpop.f32.mrb[79].mxu1 }
 0x33f PF: > { %s17_s23 = sadd.s32 1, %s2565_s23   ;;  %s2895_s21 = smov %s2561_s22 }
 0x340   : > { %p14_p4 = scmp.ge.s32.totalorder %s17_s23, 4   ;;  %s2896_s22 = smov %s2898_s25 }
 0x342   :  { %16 = sbr.rel (!%p14_p4) target bundleno = 2 (0x2), region = 91 }
 0x349   :  { %2232 = vsyncpa [#allocation3], 1 }
 0x34a   :  { %2234 = vsyncpa [#allocation3 + $0x1], 1 }

// kernel: transformation_net_forward.3
= control target key start
LH: loop header
LB: loop body
LE: loop exit
PB: predicated region body
PF: predicated region fallthrough
CT: control target
= control target key end

     0   :  { %13 = vsyncpa [#allocation3], 0  ;;  %s3787_s27 = smov [#allocation2]   ;;  %s4229_s0 = inlined_call_operand.vmem [shape: f32[2,1,1024], index: 0, kind: input, shape index: {}]   ;;  %s4230_s1 = inlined_call_operand.vmem [shape: f32[1,1024], index: 1, kind: input, shape index: {}]   ;;  %s4231_s2 = inlined_call_operand.hbm [shape: bf16[1024,512], index: 2, kind: input, shape index: {}]   ;;  %s4232_s3 = inlined_call_operand.vmem [shape: f32[1,512], index: 3, kind: input, shape index: {}]   ;;  %s4233_s4 = inlined_call_operand.vmem [shape: bf16[512,256], index: 4, kind: input, shape index: {}]   ;;  %s4234_s5 = inlined_call_operand.vmem [shape: f32[1,256], index: 5, kind: input, shape index: {}]   ;;  %s4235_s6 = inlined_call_operand.vmem [shape: bf16[256,128], index: 6, kind: input, shape index: {}]   ;;  %s4236_s7 = inlined_call_operand.vmem [shape: f32[1,128], index: 7, kind: input, shape index: {}]   ;;  %s4237_s8 = inlined_call_operand.vmem [shape: f32[2,128], index: 8, kind: output, shape index: {}]  }
   0x1   :  { %s23_s28 = sshll.u32 %s3787_s27, 4  ;;  %s3763_s9 = scalar_lea.hbm %s4231_s2, 32768  ;;  %s24_s28 = int_to_ptr.vmem [resolvable:$true] %s23_s28 }
   0x2   :  { %p3764_p0 = scmp.ne.s32.totalorder %s4231_s2, %s3763_s9  ;;  %p3767_p1 = scmp.lt.u32.totalorder %s3763_s9, %s4231_s2 }
   0x4   :  { %p3769_p2 = pnand %p3767_p1, %p3764_p0 }
   0x6   :  { %3772 = shalt.err (!%p3769_p2)
}
   0x7   :  { %s3773_s14 = scalar_lea.vmem %s24_s28, 32768  ;;  %p3778_p4 = scmp.lt.s32.totalorder %s24_s28, %s24_s28 }
   0x8   :  { %p3774_p3 = scmp.ne.s32.totalorder %s24_s28, %s3773_s14  ;;  %p3779_p5 = scmp.lt.s32.totalorder %s3773_s14, %s3773_s14 }
   0xa   :  { %p3780_p6 = por %p3779_p5, %p3778_p4 }
   0xc   :  { %p3781_p7 = pnand %p3780_p6, %p3774_p3 }
   0xe   :  { %3784 = shalt.err (!%p3781_p7)
}
   0xf   :  { %s3788_s15 = smov 256   ;;  %s3789_s16 = smov 16  }
  0x10   :  { %29 = dma.hbm_to_vmem [thread:$0]  %s4231_s2, 32768, %s24_s28, [#allocation3], %s3788_s15, %s3788_s15, %s3789_s16  }
  0x11   :  { %3785 = dma.done.wait [#allocation3], 32768  }
  0x12   :  { %3786 = vsyncadd [#allocation3], 4294934528  ;;  %v3267_v0 = vld [vmem:[#allocation2 + $0x4] ss:$16 sps:$4 sm:$0xff]   ;;  %v3271_v2 = vld [vmem:[#allocation2] ss:$16 sps:$4 sm:$0xff]   ;;  %v48_v36 = vlaneseq }
  0x13   :  { %v3269_v1 = vld [vmem:[#allocation2 + $0x204] ss:$16 sps:$4 sm:$0xff]   ;;  %1873 = vmatprep.subr.bf16.mxu1 %v3267_v0  ;;  %v3272_v3 = vld [vmem:[#allocation2 + $0x200] ss:$16 sps:$4 sm:$0xff]   ;;  %v3790_v41 = vmov 1966171168  }
  0x14   :  { %1914 = vmatprep.subr.bf16.mxu0 %v3269_v1  ;;  %v3273_v4 = vld [vmem:[#allocation2 + $0x24] ss:$16 sps:$4 sm:$0xff]   ;;  %1874 = vmatpush1.bf16.msra.mxu1 %v3271_v2  ;;  %v3277_v6 = vld [vmem:[#allocation2 + $0x20] ss:$16 sps:$4 sm:$0xff]   ;;  %v49_v40 = vshrl.u32 %v48_v36, 7  ;;  %v85_v42 = vunpack.c.l.s4 %v3790_v41  ;;  %vm561_vm0 = vcmask 1041409  }
  0x15   :  { %1915 = vmatpush1.bf16.msra.mxu0 %v3272_v3  ;;  %v3275_v5 = vld [vmem:[#allocation2 + $0x224] ss:$16 sps:$4 sm:$0xff]   ;;  %1875 = vmatprep.subr.bf16.mxu1 %v3273_v4  ;;  %v3278_v7 = vld [vmem:[#allocation2 + $0x220] ss:$16 sps:$4 sm:$0xff]  }
  0x16   :  { %1916 = vmatprep.subr.bf16.mxu0 %v3275_v5  ;;  %v3279_v8 = vld [vmem:[#allocation2 + $0x44] ss:$16 sps:$4 sm:$0xff]   ;;  %v3283_v10 = vld [vmem:[#allocation2 + $0x40] ss:$16 sps:$4 sm:$0xff]   ;;  %v3848_v48 = vsub.s32 0, %v49_v40  ;;  %v3850_v49 = vsub.s32 1, %v49_v40  ;;  %v86_v50 = vunpack.c.0.s8 %v85_v42 }
  0x17   :  { %v3281_v9 = vld [vmem:[#allocation2 + $0x244] ss:$16 sps:$4 sm:$0xff]   ;;  %v3284_v11 = vld [vmem:[#allocation2 + $0x240] ss:$16 sps:$4 sm:$0xff]   ;;  %v3852_v52 = vsub.s32 2, %v49_v40  ;;  %v3854_v53 = vsub.s32 3, %v49_v40 }
  0x18   :  { %1876 = vmatpush1.bf16.msra.mxu1 %v3277_v6  ;;  %v3285_v12 = vld [vmem:[#allocation2 + $0x64] ss:$16 sps:$4 sm:$0xff]   ;;  %v3289_v14 = vld [vmem:[#allocation2 + $0x60] ss:$16 sps:$4 sm:$0xff]   ;;  %v3856_v55 = vsub.s32 4, %v49_v40  ;;  %v3858_v56 = vsub.s32 5, %v49_v40  ;;  %v89_v61 = vsub.s32 %v86_v50, %v49_v40 }
  0x19   :  { %1917 = vmatpush1.bf16.msra.mxu0 %v3278_v7  ;;  %1877 = vmatprep.subr.bf16.mxu1 %v3279_v8  ;;  %v3287_v13 = vld [vmem:[#allocation2 + $0x264] ss:$16 sps:$4 sm:$0xff]   ;;  %v3290_v15 = vld [vmem:[#allocation2 + $0x260] ss:$16 sps:$4 sm:$0xff]   ;;  %v3860_v57 = vsub.s32 6, %v49_v40  ;;  %v3862_v58 = vsub.s32 7, %v49_v40 }
  0x1a   :  { %1918 = vmatprep.subr.bf16.mxu0 %v3281_v9  ;;  %v3291_v16 = vld [vmem:[#allocation2 + $0x84] ss:$16 sps:$4 sm:$0xff]   ;;  %v3295_v18 = vld [vmem:[#allocation2 + $0x80] ss:$16 sps:$4 sm:$0xff]   ;;  %v3368_v50 = vld [vmem:[#allocation2 + $0xc] ss:$16 sps:$4 sm:$0xff]  }
  0x1b   :  { %v3293_v17 = vld [vmem:[#allocation2 + $0x284] ss:$16 sps:$4 sm:$0xff]   ;;  %v3296_v19 = vld [vmem:[#allocation2 + $0x280] ss:$16 sps:$4 sm:$0xff]  }
  0x1c   :  { %1878 = vmatpush1.bf16.msra.mxu1 %v3283_v10  ;;  %v3297_v20 = vld [vmem:[#allocation2 + $0xa4] ss:$16 sps:$4 sm:$0xff]   ;;  %v3301_v22 = vld [vmem:[#allocation2 + $0xa0] ss:$16 sps:$4 sm:$0xff]  }
  0x1d   :  { %1919 = vmatpush1.bf16.msra.mxu0 %v3284_v11  ;;  %1879 = vmatprep.subr.bf16.mxu1 %v3285_v12  ;;  %v3299_v21 = vld [vmem:[#allocation2 + $0x2a4] ss:$16 sps:$4 sm:$0xff]   ;;  %v3302_v23 = vld [vmem:[#allocation2 + $0x2a0] ss:$16 sps:$4 sm:$0xff]  }
  0x1e   :  { %1920 = vmatprep.subr.bf16.mxu0 %v3287_v13  ;;  %v3303_v24 = vld [vmem:[#allocation2 + $0xc4] ss:$16 sps:$4 sm:$0xff]   ;;  %v3307_v26 = vld [vmem:[#allocation2 + $0xc0] ss:$16 sps:$4 sm:$0xff]  }
  0x1f   :  { %v3305_v25 = vld [vmem:[#allocation2 + $0x2c4] ss:$16 sps:$4 sm:$0xff]   ;;  %v3308_v27 = vld [vmem:[#allocation2 + $0x2c0] ss:$16 sps:$4 sm:$0xff]  }
  0x20   :  { %1880 = vmatpush1.bf16.msra.mxu1 %v3289_v14  ;;  %v3309_v28 = vld [vmem:[#allocation2 + $0xe4] ss:$16 sps:$4 sm:$0xff]   ;;  %v3313_v30 = vld [vmem:[#allocation2 + $0xe0] ss:$16 sps:$4 sm:$0xff]  }
  0x21   :  { %1921 = vmatpush1.bf16.msra.mxu0 %v3290_v15  ;;  %1881 = vmatprep.subr.bf16.mxu1 %v3291_v16  ;;  %v3311_v29 = vld [vmem:[#allocation2 + $0x2e4] ss:$16 sps:$4 sm:$0xff]   ;;  %v3314_v31 = vld [vmem:[#allocation2 + $0x2e0] ss:$16 sps:$4 sm:$0xff]  }
  0x22   :  { %1922 = vmatprep.subr.bf16.mxu0 %v3293_v17  ;;  %v3315_v32 = vld [vmem:[#allocation2 + $0x104] ss:$16 sps:$4 sm:$0xff]   ;;  %v3319_v34 = vld [vmem:[#allocation2 + $0x100] ss:$16 sps:$4 sm:$0xff]  }
  0x23   :  { %v3317_v33 = vld [vmem:[#allocation2 + $0x304] ss:$16 sps:$4 sm:$0xff]   ;;  %v3320_v35 = vld [vmem:[#allocation2 + $0x300] ss:$16 sps:$4 sm:$0xff]  }
  0x24   :  { %1882 = vmatpush1.bf16.msra.mxu1 %v3295_v18  ;;  %v3321_v37 = vld [vmem:[#allocation2 + $0x124] ss:$16 sps:$4 sm:$0xff]   ;;  %v3325_v39 = vld [vmem:[#allocation2 + $0x120] ss:$16 sps:$4 sm:$0xff]  }
  0x25   :  { %1923 = vmatpush1.bf16.msra.mxu0 %v3296_v19  ;;  %1883 = vmatprep.subr.bf16.mxu1 %v3297_v20  ;;  %v3323_v38 = vld [vmem:[#allocation2 + $0x324] ss:$16 sps:$4 sm:$0xff]   ;;  %v3326_v43 = vld [vmem:[#allocation2 + $0x320] ss:$16 sps:$4 sm:$0xff]  }
  0x26   :  { %1924 = vmatprep.subr.bf16.mxu0 %v3299_v21  ;;  %v3327_v44 = vld [vmem:[#allocation2 + $0x144] ss:$16 sps:$4 sm:$0xff]   ;;  %v3331_v46 = vld [vmem:[#allocation2 + $0x140] ss:$16 sps:$4 sm:$0xff]  }
  0x27   :  { %v3329_v45 = vld [vmem:[#allocation2 + $0x344] ss:$16 sps:$4 sm:$0xff]   ;;  %v3332_v47 = vld [vmem:[#allocation2 + $0x340] ss:$16 sps:$4 sm:$0xff]  }
  0x28   :  { %1884 = vmatpush1.bf16.msra.mxu1 %v3301_v22  ;;  %v3333_v51 = vld [vmem:[#allocation2 + $0x164] ss:$16 sps:$4 sm:$0xff]   ;;  %v3337_v59 = vld [vmem:[#allocation2 + $0x160] ss:$16 sps:$4 sm:$0xff]  }
  0x29   :  { %1925 = vmatpush1.bf16.msra.mxu0 %v3302_v23  ;;  %1885 = vmatprep.subr.bf16.mxu1 %v3303_v24  ;;  %v3335_v54 = vld [vmem:[#allocation2 + $0x364] ss:$16 sps:$4 sm:$0xff]   ;;  %v3338_v62 = vld [vmem:[#allocation2 + $0x360] ss:$16 sps:$4 sm:$0xff]  }
  0x2a   :  { %1926 = vmatprep.subr.bf16.mxu0 %v3305_v25  ;;  %v46_v60 = vld [vmem:[%s4230_s1] sm:$0xff] }
  0x2b   :  { %v3339_v63 = vld [vmem:[#allocation2 + $0x184] ss:$16 sps:$4 sm:$0xff]   ;;  %v51_v0 = vrot.slane %v46_v60, %v3848_v48  ;;  %v55_v1 = vrot.slane %v46_v60, %v3850_v49  ;;  %v59_v2 = vrot.slane %v46_v60, %v3852_v52  ;;  %v63_v4 = vrot.slane %v46_v60, %v3854_v53  ;;  %v3343_v10 = vld [vmem:[#allocation2 + $0x180] ss:$16 sps:$4 sm:$0xff]  }
  0x2c   :  { %1886 = vmatpush1.bf16.msra.mxu1 %v3307_v26  ;;  %v3341_v3 = vld [vmem:[#allocation2 + $0x384] ss:$16 sps:$4 sm:$0xff]   ;;  %v67_v5 = vrot.slane %v46_v60, %v3856_v55  ;;  %v71_v6 = vrot.slane %v46_v60, %v3858_v56  ;;  %v75_v7 = vrot.slane %v46_v60, %v3860_v57  ;;  %v79_v8 = vrot.slane %v46_v60, %v3862_v58  ;;  %v3344_v13 = vld [vmem:[#allocation2 + $0x380] ss:$16 sps:$4 sm:$0xff]  }
  0x2d   :  { %1927 = vmatpush1.bf16.msra.mxu0 %v3308_v27  ;;  %1887 = vmatprep.subr.bf16.mxu1 %v3309_v28  ;;  %v80_v9 = vcombine.low %v51_v0, %v55_v1  ;;  %v81_v11 = vcombine.low %v59_v2, %v63_v4  ;;  %v3345_v14 = vld [vmem:[#allocation2 + $0x1a4] ss:$16 sps:$4 sm:$0xff]   ;;  %v3349_v21 = vld [vmem:[#allocation2 + $0x1a0] ss:$16 sps:$4 sm:$0xff]  }
  0x2e   :  { %1928 = vmatprep.subr.bf16.mxu0 %v3311_v29  ;;  %v82_v12 = vcombine.low %v67_v5, %v71_v6  ;;  %v83_v15 = vcombine.low %v75_v7, %v79_v8  ;;  %v3347_v17 = vld [vmem:[#allocation2 + $0x3a4] ss:$16 sps:$4 sm:$0xff]   ;;  %v3350_v24 = vld [vmem:[#allocation2 + $0x3a0] ss:$16 sps:$4 sm:$0xff]  }
  0x2f   :  { %v90_v16 = vrot.slane %v80_v9, %v89_v61  ;;  %v97_v18 = vrot.slane %v81_v11, %v89_v61  ;;  %v3351_v25 = vld [vmem:[#allocation2 + $0x1c4] ss:$16 sps:$4 sm:$0xff]   ;;  %v3356_v36 = vld [vmem:[#allocation2 + $0x3c0] ss:$16 sps:$4 sm:$0xff]  }
  0x30   :  { %1888 = vmatpush1.bf16.msra.mxu1 %v3313_v30  ;;  %v104_v19 = vrot.slane %v82_v12, %v89_v61  ;;  %v111_v20 = vrot.slane %v83_v15, %v89_v61  ;;  %v3353_v28 = vld [vmem:[#allocation2 + $0x3c4] ss:$16 sps:$4 sm:$0xff]  }
  0x31   :  { %1929 = vmatpush1.bf16.msra.mxu0 %v3314_v31  ;;  %1889 = vmatprep.subr.bf16.mxu1 %v3315_v32  ;;  %v112_v22 = vcombine.low %v90_v16, %v97_v18  ;;  %v113_v23 = vcombine.high %v90_v16, %v97_v18  ;;  %v3355_v31 = vld [vmem:[#allocation2 + $0x1c0] ss:$16 sps:$4 sm:$0xff]   ;;  %v3359_v40 = vld [vmem:[#allocation2 + $0x3e4] ss:$16 sps:$4 sm:$0xff]  }
  0x32   :  { %1930 = vmatprep.subr.bf16.mxu0 %v3317_v33  ;;  %v114_v26 = vcombine.low %v104_v19, %v111_v20  ;;  %v115_v27 = vcombine.high %v104_v19, %v111_v20 }
  0x33   :  { %v122_v29 = vrot.slane %v112_v22, %v89_v61  ;;  %v129_v30 = vrot.slane %v113_v23, %v89_v61 }
  0x34   :  { %1890 = vmatpush1.bf16.msra.mxu1 %v3319_v34  ;;  %v136_v32 = vrot.slane %v114_v26, %v89_v61  ;;  %v143_v33 = vrot.slane %v115_v27, %v89_v61  ;;  %v44_v34 = vld [vmem:[%s4229_s0] sm:$0xff] }
  0x35   :  { %1931 = vmatpush1.bf16.msra.mxu0 %v3320_v35  ;;  %1891 = vmatprep.subr.bf16.mxu1 %v3321_v37  ;;  %v45_v35 = vld [vmem:[%s4229_s0 + $0x8] sm:$0xff]  ;;  %v3357_v37 = vld [vmem:[#allocation2 + $0x1e4] ss:$16 sps:$4 sm:$0xff]  }
  0x36   :  { %1932 = vmatprep.subr.bf16.mxu0 %v3323_v38  ;;  %v144_v38 = vcombine.low %v122_v29, %v136_v32 }
  0x38   :  { %1892 = vmatpush1.bf16.msra.mxu1 %v3325_v39  ;;  %v145_v39 = vcombine.low %v129_v30, %v143_v33  ;;  %v148_v41 = vadd.f32 %v144_v38, %v44_v34  ;;  %v3366_v30 = vld [vmem:[#allocation2 + $0x8] ss:$16 sps:$4 sm:$0xff]   ;;  %v3374_v33 = vld [vmem:[#allocation2 + $0x2c] ss:$16 sps:$4 sm:$0xff]  }
  0x39   :  { %1933 = vmatpush1.bf16.msra.mxu0 %v3326_v43  ;;  %1893 = vmatprep.subr.bf16.mxu1 %v3327_v44  ;;  %v3361_v43 = vld [vmem:[#allocation2 + $0x1e0] ss:$16 sps:$4 sm:$0xff]  }
  0x3a   :  { %1934 = vmatprep.subr.bf16.mxu0 %v3329_v45  ;;  %v149_v42 = vadd.f32 %v145_v39, %v45_v35  ;;  %v3362_v44 = vld [vmem:[#allocation2 + $0x3e0] ss:$16 sps:$4 sm:$0xff]   ;;  %v3881_v45 = vmax.f32 %v148_v41, 0.0  ;;  %v3371_v41 = vld [vmem:[#allocation2 + $0x424] ss:$16 sps:$4 sm:$0xff]  }
  0x3c   :  { %1894 = vmatpush1.bf16.msra.mxu1 %v3331_v46  ;;  %v3883_v46 = vmax.f32 %v149_v42, 0.0  ;;  %v169_v61 = vrot.slane %v3881_v45, %v3854_v53  ;;  %v173_v22 = vrot.slane %v3881_v45, %v3856_v55  ;;  %v185_v39 = vrot.slane %v3881_v45, %v3862_v58 }
  0x3d   :  { %1935 = vmatpush1.bf16.msra.mxu0 %v3332_v47  ;;  %1895 = vmatprep.subr.bf16.mxu1 %v3333_v51  ;;  %v3365_v47 = vld [vmem:[#allocation2 + $0x404] ss:$16 sps:$4 sm:$0xff]   ;;  %v161_v51 = vrot.slane %v3881_v45, %v3850_v49 }
  0x3e   :  { %1936 = vmatprep.subr.bf16.mxu0 %v3335_v54  ;;  %v193_v54 = vrot.slane %v3883_v46, %v3850_v49  ;;  %v189_v60 = vrot.slane %v3883_v46, %v3848_v48  ;;  %v197_v0 = vrot.slane %v3883_v46, %v3852_v52  ;;  %v237_v5 = vpack.c.bf16 %v169_v61, %v169_v61 }
  0x3f   :  { %v235_v1 = vpack.c.bf16 %v161_v51, %v161_v51  ;;  %v209_v18 = vrot.slane %v3883_v46, %v3858_v56  ;;  %v205_v26 = vrot.slane %v3883_v46, %v3856_v55  ;;  %v238_v38 = vpack.c.bf16 %v173_v22, %v173_v22  ;;  %v3396_v22 = vld [vmem:[#allocation2 + $0xa8] ss:$16 sps:$4 sm:$0xff]  }
  0x40   :  { %1896 = vmatpush1.bf16.msra.mxu1 %v3337_v59  ;;  %v157_v59 = vrot.slane %v3881_v45, %v3848_v48  ;;  %v243_v2 = vpack.c.bf16 %v193_v54, %v193_v54  ;;  %v242_v4 = vpack.c.bf16 %v189_v60, %v189_v60  ;;  %v547_v12 = vunpack.c.l.b16 %v237_v5  ;;  %v3380_v60 = vld [vmem:[#allocation2 + $0x4c] ss:$16 sps:$4 sm:$0xff]  }
  0x41   :  { %1937 = vmatpush1.bf16.msra.mxu0 %v3338_v62  ;;  %1897 = vmatprep.subr.bf16.mxu1 %v3339_v63  ;;  %v201_v62 = vrot.slane %v3883_v46, %v3854_v53  ;;  %v165_v63 = vrot.slane %v3881_v45, %v3852_v52  ;;  %v545_v7 = vunpack.c.l.b16 %v235_v1  ;;  %v246_v55 = vpack.c.bf16 %v205_v26, %v205_v26  ;;  %v3402_v26 = vld [vmem:[#allocation2 + $0xc8] ss:$16 sps:$4 sm:$0xff]  }
  0x42   :  { %1938 = vmatprep.subr.bf16.mxu0 %v3341_v3  ;;  %v234_v3 = vpack.c.bf16 %v157_v59, %v157_v59  ;;  %v553_v8 = vunpack.c.l.b16 %v243_v2  ;;  %v552_v11 = vunpack.c.l.b16 %v242_v4  ;;  %v241_v54 = vpack.c.bf16 %v185_v39, %v185_v39  ;;  %v3377_v2 = vld [vmem:[#allocation2 + $0x444] ss:$16 sps:$4 sm:$0xff]   ;;  %v3428_v39 = vld [vmem:[#allocation2 + $0x14c] ss:$16 sps:$4 sm:$0xff]  }
  0x43   :  { %v245_v6 = vpack.c.bf16 %v201_v62, %v201_v62  ;;  %v556_v51 = vunpack.c.l.b16 %v246_v55  ;;  %v213_v59 = vrot.slane %v3883_v46, %v3860_v57  ;;  %v3420_v55 = vld [vmem:[#allocation2 + $0x128] ss:$16 sps:$4 sm:$0xff]  }
  0x44   :  { %1898 = vmatpush1.bf16.msra.mxu1 %v3343_v10  ;;  %v544_v9 = vunpack.c.l.b16 %v234_v3  ;;  %v236_v10 = vpack.c.bf16 %v165_v63, %v165_v63  ;;  %v563_v15 = vrot.slane %v553_v8, 7  ;;  %v560_v19 = vrot.slane %v552_v11, 7  ;;  %v3369_v63 = vld [vmem:[#allocation2 + $0x420] ss:$16 sps:$4 sm:$0xff]   ;;  %v3383_v11 = vld [vmem:[#allocation2 + $0x464] ss:$16 sps:$4 sm:$0xff]  }
  0x45   :  { %1939 = vmatpush1.bf16.msra.mxu0 %v3344_v13  ;;  %1899 = vmatprep.subr.bf16.mxu1 %v3345_v14  ;;  %v555_v13 = vunpack.c.l.b16 %v245_v6  ;;  %v244_v14 = vpack.c.bf16 %v197_v0, %v197_v0  ;;  %v569_v0 = vrot.slane %v556_v51, 7  ;;  %v248_v1 = vpack.c.bf16 %v213_v59, %v213_v59  ;;  %v3432_v51 = vld [vmem:[#allocation2 + $0x168] ss:$16 sps:$4 sm:$0xff]   ;;  %v3429_v59 = vld [vmem:[#allocation2 + $0x560] ss:$16 sps:$4 sm:$0xff]  }
  0x46   :  { %1940 = vmatprep.subr.bf16.mxu0 %v3347_v17  ;;  %v546_v16 = vunpack.c.l.b16 %v236_v10  ;;  %v177_v17 = vrot.slane %v3881_v45, %v3858_v56  ;;  %v564_v23 = vsel %vm561_vm0, %v563_v15, %v545_v7  ;;  %v551_v3 = vunpack.c.l.b16 %v241_v54  ;;  %v3386_v7 = vld [vmem:[#allocation2 + $0x6c] ss:$16 sps:$4 sm:$0xff]  }
  0x47   :  { %v567_v20 = vrot.slane %v555_v13, 7  ;;  %v578_v27 = vpack.c.b16 %v564_v23, %v564_v23  ;;  %v558_v6 = vunpack.c.l.b16 %v248_v1  ;;  %v3384_v13 = vld [vmem:[#allocation2 + $0x68] ss:$16 sps:$4 sm:$0xff]   ;;  %v3392_v15 = vld [vmem:[#allocation2 + $0x8c] ss:$16 sps:$4 sm:$0xff]  }
  0x48   :  { %1900 = vmatpush1.bf16.msra.mxu1 %v3349_v21  ;;  %v554_v21 = vunpack.c.l.b16 %v244_v14  ;;  %v3404_v23 = vld [vmem:[#allocation2 + $0xcc] ss:$16 sps:$4 sm:$0xff]  }
  0x49   :  { %1941 = vmatpush1.bf16.msra.mxu0 %v3350_v24  ;;  %1901 = vmatprep.subr.bf16.mxu1 %v3351_v25  ;;  %v239_v24 = vpack.c.bf16 %v177_v17, %v177_v17  ;;  %v247_v25 = vpack.c.bf16 %v209_v18, %v209_v18  ;;  %v568_v29 = vsel %vm561_vm0, %v567_v20, %v547_v12  ;;  %v573_v10 = vrot.slane %v558_v6, 7  ;;  %v3389_v17 = vld [vmem:[#allocation2 + $0x484] ss:$16 sps:$4 sm:$0xff]   ;;  %v3390_v18 = vld [vmem:[#allocation2 + $0x88] ss:$16 sps:$4 sm:$0xff]  }
  0x4a   :  { %1942 = vmatprep.subr.bf16.mxu0 %v3353_v28  ;;  %v562_v28 = vsel %vm561_vm0, %v560_v19, %v544_v9  ;;  %v565_v56 = vrot.slane %v554_v21, 7  ;;  %v3914_v32 = vpack.c.b16 %v568_v29, %v568_v29  ;;  %1905 = vmatprep.mubr.bf16.mxu1 %v578_v27  ;;  %v3375_v9 = vld [vmem:[#allocation2 + $0x440] ss:$16 sps:$4 sm:$0xff]   ;;  %v3398_v19 = vld [vmem:[#allocation2 + $0xac] ss:$16 sps:$4 sm:$0xff]  }
  0x4b   :  { %v549_v34 = vunpack.c.l.b16 %v239_v24  ;;  %v557_v35 = vunpack.c.l.b16 %v247_v25  ;;  %v3387_v20 = vld [vmem:[#allocation2 + $0x480] ss:$16 sps:$4 sm:$0xff]   ;;  %v3395_v21 = vld [vmem:[#allocation2 + $0x4a4] ss:$16 sps:$4 sm:$0xff]   ;;  %v3440_v54 = vld [vmem:[#allocation2 + $0x18c] ss:$16 sps:$4 sm:$0xff]  }
  0x4c   :  { %1902 = vmatpush1.bf16.msra.mxu1 %v3355_v31  ;;  %v3912_v31 = vpack.c.b16 %v562_v28, %v562_v28  ;;  %1946 = vmatprep.mubr.bf16.mxu0 %v3914_v32  ;;  %v3393_v24 = vld [vmem:[#allocation2 + $0x4a0] ss:$16 sps:$4 sm:$0xff]   ;;  %v3401_v25 = vld [vmem:[#allocation2 + $0x4c4] ss:$16 sps:$4 sm:$0xff]   ;;  %v3452_v1 = vld [vmem:[#allocation2 + $0x1cc] ss:$16 sps:$4 sm:$0xff]  }
  0x4d   :  { %1943 = vmatpush1.bf16.msra.mxu0 %v3356_v36  ;;  %1903 = vmatprep.subr.bf16.mxu1 %v3357_v37  ;;  %v3363_v36 = vld [vmem:[#allocation2 + $0x400] ss:$16 sps:$4 sm:$0xff]   ;;  %v566_v37 = vsel %vm561_vm0, %v565_v56, %v546_v16  ;;  %v571_v42 = vrot.slane %v557_v35, 7  ;;  %v3407_v29 = vld [vmem:[#allocation2 + $0x4e4] ss:$16 sps:$4 sm:$0xff]  }
  0x4e   :  { %1944 = vmatprep.subr.bf16.mxu0 %v3359_v40  ;;  %v3921_v40 = vpack.c.b16 %v566_v37, %v566_v37  ;;  %v3381_v16 = vld [vmem:[#allocation2 + $0x460] ss:$16 sps:$4 sm:$0xff]   ;;  %v3416_v56 = vld [vmem:[#allocation2 + $0x10c] ss:$16 sps:$4 sm:$0xff]   ;;  %v3414_v35 = vld [vmem:[#allocation2 + $0x108] ss:$16 sps:$4 sm:$0xff]  }
  0x4f   :  { %v572_v61 = vsel %vm561_vm0, %v571_v42, %v549_v34  ;;  %v3399_v28 = vld [vmem:[#allocation2 + $0x4c0] ss:$16 sps:$4 sm:$0xff]   ;;  %v3413_v34 = vld [vmem:[#allocation2 + $0x504] ss:$16 sps:$4 sm:$0xff]  }
  0x50   :  { %1904 = vmatpush1.bf16.msra.mxu1 %v3361_v43  ;;  %v217_v43 = vrot.slane %v3883_v46, %v3862_v58  ;;  %v3411_v37 = vld [vmem:[#allocation2 + $0x500] ss:$16 sps:$4 sm:$0xff]   ;;  %v3425_v42 = vld [vmem:[#allocation2 + $0x544] ss:$16 sps:$4 sm:$0xff]  }
  0x51   :  { %1945 = vmatpush1.bf16.msra.mxu0 %v3362_v44  ;;  %2037 = vmatprep.subr.bf16.mxu1 %v3368_v50  ;;  %v181_v44 = vrot.slane %v3881_v45, %v3860_v57  ;;  %v548_v50 = vunpack.c.l.b16 %v238_v38  ;;  %v3931_v45 = vpack.c.b16 %v572_v61, %v572_v61  ;;  %v3378_v57 = vld [vmem:[#allocation2 + $0x48] ss:$16 sps:$4 sm:$0xff]   ;;  %v3419_v38 = vld [vmem:[#allocation2 + $0x524] ss:$16 sps:$4 sm:$0xff]  }
  0x52   :  { %1955 = vmatprep.subr.bf16.mxu0 %v3365_v47  ;;  %v3372_v47 = vld [vmem:[#allocation2 + $0x28] ss:$16 sps:$4 sm:$0xff]   ;;  %v249_v62 = vpack.c.bf16 %v217_v43, %v217_v43  ;;  %v3455_v6 = vld [vmem:[#allocation2 + $0x5e4] ss:$16 sps:$4 sm:$0xff]  }
  0x53   :  { %1906 = vmatmul.mubr.bf16.vlgmr.msra.gmra.mrb[0].mxu1 %v3912_v31  ;;  %v240_v58 = vpack.c.bf16 %v181_v44, %v181_v44  ;;  %v3935_v46 = vsel %vm561_vm0, %v569_v0, %v548_v50  ;;  %v3426_v43 = vld [vmem:[#allocation2 + $0x148] ss:$16 sps:$4 sm:$0xff]   ;;  %v3434_v44 = vld [vmem:[#allocation2 + $0x16c] ss:$16 sps:$4 sm:$0xff]   ;;  %v3431_v50 = vld [vmem:[#allocation2 + $0x564] ss:$16 sps:$4 sm:$0xff]  }
  0x54   :  { %2038 = vmatpush1.bf16.msra.mxu1 %v3366_v30  ;;  %2069 = vmatprep.mubr.bf16.mxu1 %v578_v27  ;;  %v559_v4 = vunpack.c.l.b16 %v249_v62  ;;  %v3410_v27 = vld [vmem:[#allocation2 + $0xec] ss:$16 sps:$4 sm:$0xff]   ;;  %v3408_v30 = vld [vmem:[#allocation2 + $0xe8] ss:$16 sps:$4 sm:$0xff]  }
  0x55   :  { %1947 = vmatmul.mubr.bf16.vlgmr.msra.gmra.mrb[0].mxu0 %v3921_v40  ;;  %2039 = vmatprep.subr.bf16.mxu1 %v3374_v33  ;;  %v550_v5 = vunpack.c.l.b16 %v240_v58  ;;  %v3405_v33 = vld [vmem:[#allocation2 + $0x4e0] ss:$16 sps:$4 sm:$0xff]   ;;  %v3438_v61 = vld [vmem:[#allocation2 + $0x188] ss:$16 sps:$4 sm:$0xff]   ;;  %v3446_v62 = vld [vmem:[#allocation2 + $0x1ac] ss:$16 sps:$4 sm:$0xff]  }
  0x56   :  { %1956 = vmatpush1.bf16.msra.mxu0 %v3363_v36  ;;  %1987 = vmatprep.mubr.bf16.mxu0 %v3931_v45  ;;  %v575_v8 = vrot.slane %v559_v4, 7  ;;  %v3422_v36 = vld [vmem:[#allocation2 + $0x12c] ss:$16 sps:$4 sm:$0xff]   ;;  %v3435_v58 = vld [vmem:[#allocation2 + $0x580] ss:$16 sps:$4 sm:$0xff]  }
  0x57   :  { %1957 = vmatprep.subr.bf16.mxu0 %v3371_v41  ;;  %v3941_v14 = vsel %vm561_vm0, %v573_v10, %v550_v5  ;;  %v3417_v41 = vld [vmem:[#allocation2 + $0x520] ss:$16 sps:$4 sm:$0xff]   ;;  %v3444_v0 = vld [vmem:[#allocation2 + $0x1a8] ss:$16 sps:$4 sm:$0xff]   ;;  %v3461_v10 = vld [vmem:[#allocation2 + $0x604] ss:$16 sps:$4 sm:$0xff]  }
  0x58   :  { %2040 = vmatpush1.bf16.msra.mxu1 %v3372_v47  ;;  %v3938_v12 = vsel %vm561_vm0, %v575_v8, %v551_v3  ;;  %v3423_v47 = vld [vmem:[#allocation2 + $0x540] ss:$16 sps:$4 sm:$0xff]   ;;  %v3449_v3 = vld [vmem:[#allocation2 + $0x5c4] ss:$16 sps:$4 sm:$0xff]   ;;  %v3450_v4 = vld [vmem:[#allocation2 + $0x1c8] ss:$16 sps:$4 sm:$0xff]  }
  0x59   :  { %2041 = vmatprep.subr.bf16.mxu1 %v3380_v60  ;;  %v3437_v60 = vld [vmem:[#allocation2 + $0x584] ss:$16 sps:$4 sm:$0xff]   ;;  %v3447_v5 = vld [vmem:[#allocation2 + $0x5c0] ss:$16 sps:$4 sm:$0xff]   ;;  %v3464_v8 = vld [vmem:[#allocation2 + $0x20c] ss:$16 sps:$4 sm:$0xff]  }
  0x5a   :  { %1958 = vmatpush1.bf16.msra.mxu0 %v3369_v63  ;;  %v3443_v63 = vld [vmem:[#allocation2 + $0x5a4] ss:$16 sps:$4 sm:$0xff]  }
  0x5b   :  { %1959 = vmatprep.subr.bf16.mxu0 %v3377_v2  ;;  %v3441_v2 = vld [vmem:[#allocation2 + $0x5a0] ss:$16 sps:$4 sm:$0xff]  }
  0x5c   :  { %2042 = vmatpush1.bf16.msra.mxu1 %v3378_v57  ;;  %v3458_v57 = vld [vmem:[#allocation2 + $0x1ec] ss:$16 sps:$4 sm:$0xff]  }
  0x5d   :  { %2043 = vmatprep.subr.bf16.mxu1 %v3386_v7  ;;  %v3456_v7 = vld [vmem:[#allocation2 + $0x1e8] ss:$16 sps:$4 sm:$0xff]  }
  0x5e   :  { %1960 = vmatpush1.bf16.msra.mxu0 %v3375_v9  ;;  %v3453_v9 = vld [vmem:[#allocation2 + $0x5e0] ss:$16 sps:$4 sm:$0xff]  }
  0x5f   :  { %1961 = vmatprep.subr.bf16.mxu0 %v3383_v11  ;;  %v3462_v11 = vld [vmem:[#allocation2 + $0x208] ss:$16 sps:$4 sm:$0xff]  }
  0x60   :  { %2044 = vmatpush1.bf16.msra.mxu1 %v3384_v13  ;;  %v3945_v13 = vpack.c.b16 %v3935_v46, %v3935_v46  ;;  %v3476_v46 = vld [vmem:[#allocation2 + $0x24c] ss:$16 sps:$4 sm:$0xff]  }
  0x61   :  { %2045 = vmatprep.subr.bf16.mxu1 %v3392_v15  ;;  %v3470_v15 = vld [vmem:[#allocation2 + $0x22c] ss:$16 sps:$4 sm:$0xff]  }
  0x62   :  { %1962 = vmatpush1.bf16.msra.mxu0 %v3381_v16  ;;  %v3459_v16 = vld [vmem:[#allocation2 + $0x600] ss:$16 sps:$4 sm:$0xff]  }
  0x63   :  { %1963 = vmatprep.subr.bf16.mxu0 %v3389_v17  ;;  %v3949_v17 = vpack.c.b16 %v3938_v12, %v3938_v12  ;;  %v3474_v12 = vld [vmem:[#allocation2 + $0x248] ss:$16 sps:$4 sm:$0xff]  }
  0x64   :  { %2046 = vmatpush1.bf16.msra.mxu1 %v3390_v18  ;;  %v3467_v18 = vld [vmem:[#allocation2 + $0x624] ss:$16 sps:$4 sm:$0xff]  }
  0x65   :  { %2047 = vmatprep.subr.bf16.mxu1 %v3398_v19  ;;  %v3468_v19 = vld [vmem:[#allocation2 + $0x228] ss:$16 sps:$4 sm:$0xff]  }
  0x66   :  { %1964 = vmatpush1.bf16.msra.mxu0 %v3387_v20  ;;  %v3465_v20 = vld [vmem:[#allocation2 + $0x620] ss:$16 sps:$4 sm:$0xff]  }
  0x67   :  { %1965 = vmatprep.subr.bf16.mxu0 %v3395_v21  ;;  %v3473_v21 = vld [vmem:[#allocation2 + $0x644] ss:$16 sps:$4 sm:$0xff]  }
  0x68   :  { %2048 = vmatpush1.bf16.msra.mxu1 %v3396_v22  ;;  %v3482_v22 = vld [vmem:[#allocation2 + $0x26c] ss:$16 sps:$4 sm:$0xff]  }
  0x69   :  { %2049 = vmatprep.subr.bf16.mxu1 %v3404_v23  ;;  %v3479_v23 = vld [vmem:[#allocation2 + $0x664] ss:$16 sps:$4 sm:$0xff]  }
  0x6a   :  { %1966 = vmatpush1.bf16.msra.mxu0 %v3393_v24  ;;  %v3488_v24 = vld [vmem:[#allocation2 + $0x28c] ss:$16 sps:$4 sm:$0xff]  }
  0x6b   :  { %1967 = vmatprep.subr.bf16.mxu0 %v3401_v25  ;;  %v3477_v25 = vld [vmem:[#allocation2 + $0x660] ss:$16 sps:$4 sm:$0xff]  }
  0x6c   :  { %2050 = vmatpush1.bf16.msra.mxu1 %v3402_v26  ;;  %v3485_v26 = vld [vmem:[#allocation2 + $0x684] ss:$16 sps:$4 sm:$0xff]  }
  0x6d   :  { %2051 = vmatprep.subr.bf16.mxu1 %v3410_v27  ;;  %v3486_v27 = vld [vmem:[#allocation2 + $0x288] ss:$16 sps:$4 sm:$0xff]  }
  0x6e   :  { %1968 = vmatpush1.bf16.msra.mxu0 %v3399_v28  ;;  %v3494_v28 = vld [vmem:[#allocation2 + $0x2ac] ss:$16 sps:$4 sm:$0xff]  }
  0x6f   :  { %1969 = vmatprep.subr.bf16.mxu0 %v3407_v29  ;;  %v3483_v29 = vld [vmem:[#allocation2 + $0x680] ss:$16 sps:$4 sm:$0xff]  }
  0x70   :  { %2052 = vmatpush1.bf16.msra.mxu1 %v3408_v30  ;;  %v3491_v30 = vld [vmem:[#allocation2 + $0x6a4] ss:$16 sps:$4 sm:$0xff]  }
  0x71   :  { %2053 = vmatprep.subr.bf16.mxu1 %v3416_v56  ;;  %v3492_v56 = vld [vmem:[#allocation2 + $0x2a8] ss:$16 sps:$4 sm:$0xff]  }
  0x72   :  { %1970 = vmatpush1.bf16.msra.mxu0 %v3405_v33  ;;  %v3500_v33 = vld [vmem:[#allocation2 + $0x2cc] ss:$16 sps:$4 sm:$0xff]  }
  0x73   :  { %1971 = vmatprep.subr.bf16.mxu0 %v3413_v34  ;;  %v3489_v34 = vld [vmem:[#allocation2 + $0x6a0] ss:$16 sps:$4 sm:$0xff]  }
  0x74   :  { %2054 = vmatpush1.bf16.msra.mxu1 %v3414_v35  ;;  %v3497_v35 = vld [vmem:[#allocation2 + $0x6c4] ss:$16 sps:$4 sm:$0xff]  }
  0x75   :  { %2055 = vmatprep.subr.bf16.mxu1 %v3422_v36  ;;  %v3495_v36 = vld [vmem:[#allocation2 + $0x6c0] ss:$16 sps:$4 sm:$0xff]  }
  0x76   :  { %1972 = vmatpush1.bf16.msra.mxu0 %v3411_v37  ;;  %v3498_v37 = vld [vmem:[#allocation2 + $0x2c8] ss:$16 sps:$4 sm:$0xff]  }
  0x77   :  { %1973 = vmatprep.subr.bf16.mxu0 %v3419_v38  ;;  %v3503_v38 = vld [vmem:[#allocation2 + $0x6e4] ss:$16 sps:$4 sm:$0xff]  }
  0x78   :  { %2056 = vmatpush1.bf16.msra.mxu1 %v3420_v55  ;;  %v3506_v55 = vld [vmem:[#allocation2 + $0x2ec] ss:$16 sps:$4 sm:$0xff]  }
  0x79   :  { %2057 = vmatprep.subr.bf16.mxu1 %v3428_v39  ;;  %v3501_v39 = vld [vmem:[#allocation2 + $0x6e0] ss:$16 sps:$4 sm:$0xff]  }
  0x7a   :  { %1974 = vmatpush1.bf16.msra.mxu0 %v3417_v41  ;;  %v3504_v41 = vld [vmem:[#allocation2 + $0x2e8] ss:$16 sps:$4 sm:$0xff]  }
  0x7b   :  { %1975 = vmatprep.subr.bf16.mxu0 %v3425_v42  ;;  %v3512_v42 = vld [vmem:[#allocation2 + $0x30c] ss:$16 sps:$4 sm:$0xff]  }
  0x7c   :  { %2058 = vmatpush1.bf16.msra.mxu1 %v3426_v43  ;;  %v3509_v43 = vld [vmem:[#allocation2 + $0x704] ss:$16 sps:$4 sm:$0xff]  }
  0x7d   :  { %2059 = vmatprep.subr.bf16.mxu1 %v3434_v44  ;;  %v3507_v44 = vld [vmem:[#allocation2 + $0x700] ss:$16 sps:$4 sm:$0xff]  }
  0x7e   :  { %1976 = vmatpush1.bf16.msra.mxu0 %v3423_v47  ;;  %v3510_v47 = vld [vmem:[#allocation2 + $0x308] ss:$16 sps:$4 sm:$0xff]  }
  0x7f   :  { %1977 = vmatprep.subr.bf16.mxu0 %v3431_v50  ;;  %v3518_v50 = vld [vmem:[#allocation2 + $0x32c] ss:$16 sps:$4 sm:$0xff]  }
  0x80   :  { %2060 = vmatpush1.bf16.msra.mxu1 %v3432_v51  ;;  %v3515_v51 = vld [vmem:[#allocation2 + $0x724] ss:$16 sps:$4 sm:$0xff]  }
  0x81   :  { %2061 = vmatprep.subr.bf16.mxu1 %v3440_v54  ;;  %v3513_v54 = vld [vmem:[#allocation2 + $0x720] ss:$16 sps:$4 sm:$0xff]  }
  0x82   :  { %1978 = vmatpush1.bf16.msra.mxu0 %v3429_v59  ;;  %v3516_v59 = vld [vmem:[#allocation2 + $0x328] ss:$16 sps:$4 sm:$0xff]  }
  0x83   :  { %1979 = vmatprep.subr.bf16.mxu0 %v3437_v60  ;;  %v3524_v60 = vld [vmem:[#allocation2 + $0x34c] ss:$16 sps:$4 sm:$0xff]  }
  0x84   :  { %2062 = vmatpush1.bf16.msra.mxu1 %v3438_v61  ;;  %v3521_v61 = vld [vmem:[#allocation2 + $0x744] ss:$16 sps:$4 sm:$0xff]  }
  0x85   :  { %2063 = vmatprep.subr.bf16.mxu1 %v3446_v62  ;;  %v3519_v62 = vld [vmem:[#allocation2 + $0x740] ss:$16 sps:$4 sm:$0xff]  }
  0x86   :  { %1980 = vmatpush1.bf16.msra.mxu0 %v3435_v58  ;;  %v3522_v58 = vld [vmem:[#allocation2 + $0x348] ss:$16 sps:$4 sm:$0xff]  }
  0x87   :  { %1981 = vmatprep.subr.bf16.mxu0 %v3443_v63  ;;  %v3530_v63 = vld [vmem:[#allocation2 + $0x36c] ss:$16 sps:$4 sm:$0xff]  }
  0x88   :  { %2064 = vmatpush1.bf16.msra.mxu1 %v3444_v0  ;;  %v3527_v0 = vld [vmem:[#allocation2 + $0x764] ss:$16 sps:$4 sm:$0xff]  }
  0x89   :  { %2065 = vmatprep.subr.bf16.mxu1 %v3452_v1  ;;  %v3525_v1 = vld [vmem:[#allocation2 + $0x760] ss:$16 sps:$4 sm:$0xff]  }
  0x8a   :  { %1982 = vmatpush1.bf16.msra.mxu0 %v3441_v2  ;;  %v3528_v2 = vld [vmem:[#allocation2 + $0x368] ss:$16 sps:$4 sm:$0xff]  }
  0x8b   :  { %1983 = vmatprep.subr.bf16.mxu0 %v3449_v3  ;;  %v3536_v3 = vld [vmem:[#allocation2 + $0x38c] ss:$16 sps:$4 sm:$0xff]  }
  0x8c   :  { %2066 = vmatpush1.bf16.msra.mxu1 %v3450_v4  ;;  %v3533_v4 = vld [vmem:[#allocation2 + $0x784] ss:$16 sps:$4 sm:$0xff]  }
  0x8d   :  { %2067 = vmatprep.subr.bf16.mxu1 %v3458_v57  ;;  %v3531_v57 = vld [vmem:[#allocation2 + $0x780] ss:$16 sps:$4 sm:$0xff]  }
  0x8e   :  { %1984 = vmatpush1.bf16.msra.mxu0 %v3447_v5  ;;  %v3534_v5 = vld [vmem:[#allocation2 + $0x388] ss:$16 sps:$4 sm:$0xff]  }
  0x8f   :  { %1985 = vmatprep.subr.bf16.mxu0 %v3455_v6  ;;  %v3542_v6 = vld [vmem:[#allocation2 + $0x3ac] ss:$16 sps:$4 sm:$0xff]  }
  0x90   :  { %2068 = vmatpush1.bf16.msra.mxu1 %v3456_v7  ;;  %v3539_v7 = vld [vmem:[#allocation2 + $0x7a4] ss:$16 sps:$4 sm:$0xff]  }
  0x91   :  { %2078 = vmatprep.subr.bf16.mxu1 %v3464_v8  ;;  %v3537_v8 = vld [vmem:[#allocation2 + $0x7a0] ss:$16 sps:$4 sm:$0xff]  }
  0x92   :  { %1986 = vmatpush1.bf16.msra.mxu0 %v3453_v9  ;;  %v3540_v9 = vld [vmem:[#allocation2 + $0x3a8] ss:$16 sps:$4 sm:$0xff]  }
  0x93   :  { %1996 = vmatprep.subr.bf16.mxu0 %v3461_v10  ;;  %2070 = vmatmul.mubr.bf16.vlgmr.msra.gmra.mrb[4].mxu1 %v3912_v31  ;;  %v3471_v31 = vld [vmem:[#allocation2 + $0x640] ss:$16 sps:$4 sm:$0xff]   ;;  %v3548_v10 = vld [vmem:[#allocation2 + $0x3cc] ss:$16 sps:$4 sm:$0xff]  }
  0x94   :  { %2079 = vmatpush1.bf16.msra.mxu1 %v3462_v11  ;;  %2110 = vmatprep.mubr.bf16.mxu1 %v3914_v32  ;;  %v3480_v32 = vld [vmem:[#allocation2 + $0x268] ss:$16 sps:$4 sm:$0xff]   ;;  %v3545_v11 = vld [vmem:[#allocation2 + $0x7c4] ss:$16 sps:$4 sm:$0xff]  }
  0x95   :  { %1988 = vmatmul.mubr.bf16.vlgmr.msra.gmra.mrb[0].mxu0 %v3945_v13  ;;  %2080 = vmatprep.subr.bf16.mxu1 %v3470_v15  ;;  %v3543_v15 = vld [vmem:[#allocation2 + $0x7c0] ss:$16 sps:$4 sm:$0xff]  }
  0x96   :  { %1997 = vmatpush1.bf16.msra.mxu0 %v3459_v16  ;;  %2028 = vmatprep.mubr.bf16.mxu0 %v3949_v17  ;;  %v3546_v16 = vld [vmem:[#allocation2 + $0x3c8] ss:$16 sps:$4 sm:$0xff]  }
  0x97   :  { %1998 = vmatprep.subr.bf16.mxu0 %v3467_v18  ;;  %v3554_v18 = vld [vmem:[#allocation2 + $0x3ec] ss:$16 sps:$4 sm:$0xff]  }
  0x98   :  { %2081 = vmatpush1.bf16.msra.mxu1 %v3468_v19  ;;  %v3551_v19 = vld [vmem:[#allocation2 + $0x7e4] ss:$16 sps:$4 sm:$0xff]  }
  0x99   :  { %2082 = vmatprep.subr.bf16.mxu1 %v3476_v46  ;;  %v3549_v46 = vld [vmem:[#allocation2 + $0x7e0] ss:$16 sps:$4 sm:$0xff]  }
  0x9a   :  { %1999 = vmatpush1.bf16.msra.mxu0 %v3465_v20  ;;  %v3552_v20 = vld [vmem:[#allocation2 + $0x3e8] ss:$16 sps:$4 sm:$0xff]  }
  0x9b   :  { %2000 = vmatprep.subr.bf16.mxu0 %v3473_v21  ;;  %v3557_v21 = vld [vmem:[#allocation2 + $0x40c] ss:$16 sps:$4 sm:$0xff]  }
  0x9c   :  { %2083 = vmatpush1.bf16.msra.mxu1 %v3474_v12  ;;  %v3555_v12 = vld [vmem:[#allocation2 + $0x408] ss:$16 sps:$4 sm:$0xff]  }
  0x9d   :  { %2084 = vmatprep.subr.bf16.mxu1 %v3482_v22  ;;  %v3560_v22 = vld [vmem:[#allocation2 + $0x42c] ss:$16 sps:$4 sm:$0xff]  }
  0x9e   :  { %2001 = vmatpush1.bf16.msra.mxu0 %v3471_v31  ;;  %v3957_v31 = vpack.c.b16 %v3941_v14, %v3941_v14  ;;  %v3656_v14 = vld [vmem:[%s4233_s4 + $0x14] ss:$8 sps:$4 sm:$0xff]  }
  0x9f   :  { %2002 = vmatprep.subr.bf16.mxu0 %v3479_v23  ;;  %v3651_v23 = vld [vmem:[%s4233_s4] ss:$8 sps:$4 sm:$0xff]  }
  0xa0   :  { %2085 = vmatpush1.bf16.msra.mxu1 %v3480_v32  ;;  %v3653_v32 = vld [vmem:[%s4233_s4 + $0x4] ss:$8 sps:$4 sm:$0xff]  }
  0xa1   :  { %2086 = vmatprep.subr.bf16.mxu1 %v3488_v24  ;;  %v3558_v24 = vld [vmem:[#allocation2 + $0x428] ss:$16 sps:$4 sm:$0xff]  }
  0xa2   :  { %2003 = vmatpush1.bf16.msra.mxu0 %v3477_v25  ;;  %v3654_v25 = vld [vmem:[%s4233_s4 + $0x10] ss:$8 sps:$4 sm:$0xff]  }
  0xa3   :  { %2004 = vmatprep.subr.bf16.mxu0 %v3485_v26  ;;  %v3561_v26 = vld [vmem:[#allocation2 + $0x448] ss:$16 sps:$4 sm:$0xff]  }
  0xa4   :  { %2087 = vmatpush1.bf16.msra.mxu1 %v3486_v27  ;;  %v3566_v27 = vld [vmem:[#allocation2 + $0x46c] ss:$16 sps:$4 sm:$0xff]  }
  0xa5   :  { %2088 = vmatprep.subr.bf16.mxu1 %v3494_v28  ;;  %v3564_v28 = vld [vmem:[#allocation2 + $0x468] ss:$16 sps:$4 sm:$0xff]  }
  0xa6   :  { %2005 = vmatpush1.bf16.msra.mxu0 %v3483_v29  ;;  %v3569_v29 = vld [vmem:[#allocation2 + $0x48c] ss:$16 sps:$4 sm:$0xff]  }
  0xa7   :  { %2006 = vmatprep.subr.bf16.mxu0 %v3491_v30  ;;  %v3657_v30 = vld [vmem:[%s4233_s4 + $0x20] ss:$8 sps:$4 sm:$0xff]  }
  0xa8   :  { %2089 = vmatpush1.bf16.msra.mxu1 %v3492_v56  ;;  %v3662_v56 = vld [vmem:[%s4233_s4 + $0x34] ss:$8 sps:$4 sm:$0xff]  }
  0xa9   :  { %2090 = vmatprep.subr.bf16.mxu1 %v3500_v33  ;;  %v3660_v33 = vld [vmem:[%s4233_s4 + $0x30] ss:$8 sps:$4 sm:$0xff]  }
  0xaa   :  { %2007 = vmatpush1.bf16.msra.mxu0 %v3489_v34  ;;  %v3567_v34 = vld [vmem:[#allocation2 + $0x488] ss:$16 sps:$4 sm:$0xff]  }
  0xab   :  { %2008 = vmatprep.subr.bf16.mxu0 %v3497_v35  ;;  %v3665_v35 = vld [vmem:[%s4233_s4 + $0x44] ss:$8 sps:$4 sm:$0xff]  }
  0xac   :  { %2091 = vmatpush1.bf16.msra.mxu1 %v3498_v37  ;;  %v3663_v37 = vld [vmem:[%s4233_s4 + $0x40] ss:$8 sps:$4 sm:$0xff]  }
  0xad   :  { %2092 = vmatprep.subr.bf16.mxu1 %v3506_v55  ;;  %v3668_v55 = vld [vmem:[%s4233_s4 + $0x54] ss:$8 sps:$4 sm:$0xff]  }
  0xae   :  { %2009 = vmatpush1.bf16.msra.mxu0 %v3495_v36  ;;  %v3572_v36 = vld [vmem:[#allocation2 + $0x4ac] ss:$16 sps:$4 sm:$0xff]  }
  0xaf   :  { %2010 = vmatprep.subr.bf16.mxu0 %v3503_v38  ;;  %v3570_v38 = vld [vmem:[#allocation2 + $0x4a8] ss:$16 sps:$4 sm:$0xff]  }
  0xb0   :  { %2093 = vmatpush1.bf16.msra.mxu1 %v3504_v41  ;;  %v3666_v41 = vld [vmem:[%s4233_s4 + $0x50] ss:$8 sps:$4 sm:$0xff]  }
  0xb1   :  { %2094 = vmatprep.subr.bf16.mxu1 %v3512_v42  ;;  %v3573_v42 = vld [vmem:[#allocation2 + $0x4c8] ss:$16 sps:$4 sm:$0xff]  }
  0xb2   :  { %2011 = vmatpush1.bf16.msra.mxu0 %v3501_v39  ;;  %v3575_v39 = vld [vmem:[#allocation2 + $0x4cc] ss:$16 sps:$4 sm:$0xff]  }
  0xb3   :  { %2012 = vmatprep.subr.bf16.mxu0 %v3509_v43  ;;  %v3671_v43 = vld [vmem:[%s4233_s4 + $0x64] ss:$8 sps:$4 sm:$0xff]  }
  0xb4   :  { %2095 = vmatpush1.bf16.msra.mxu1 %v3510_v47  ;;  %v3669_v47 = vld [vmem:[%s4233_s4 + $0x60] ss:$8 sps:$4 sm:$0xff]  }
  0xb5   :  { %2096 = vmatprep.subr.bf16.mxu1 %v3518_v50  ;;  %v3576_v50 = vld [vmem:[#allocation2 + $0x4e8] ss:$16 sps:$4 sm:$0xff]  }
  0xb6   :  { %2013 = vmatpush1.bf16.msra.mxu0 %v3507_v44  ;;  %v3578_v44 = vld [vmem:[#allocation2 + $0x4ec] ss:$16 sps:$4 sm:$0xff]  }
  0xb7   :  { %2014 = vmatprep.subr.bf16.mxu0 %v3515_v51  ;;  %v3674_v51 = vld [vmem:[%s4233_s4 + $0x74] ss:$8 sps:$4 sm:$0xff]  }
  0xb8   :  { %2097 = vmatpush1.bf16.msra.mxu1 %v3516_v59  ;;  %v3672_v59 = vld [vmem:[%s4233_s4 + $0x70] ss:$8 sps:$4 sm:$0xff]  }
  0xb9   :  { %2098 = vmatprep.subr.bf16.mxu1 %v3524_v60  ;;  %v3579_v60 = vld [vmem:[#allocation2 + $0x508] ss:$16 sps:$4 sm:$0xff]  }
  0xba   :  { %2015 = vmatpush1.bf16.msra.mxu0 %v3513_v54  ;;  %v3581_v54 = vld [vmem:[#allocation2 + $0x50c] ss:$16 sps:$4 sm:$0xff]  }
  0xbb   :  { %2016 = vmatprep.subr.bf16.mxu0 %v3521_v61  ;;  %v3677_v61 = vld [vmem:[%s4233_s4 + $0x84] ss:$8 sps:$4 sm:$0xff]  }
  0xbc   :  { %2099 = vmatpush1.bf16.msra.mxu1 %v3522_v58  ;;  %v3675_v58 = vld [vmem:[%s4233_s4 + $0x80] ss:$8 sps:$4 sm:$0xff]  }
  0xbd   :  { %2100 = vmatprep.subr.bf16.mxu1 %v3530_v63  ;;  %v3582_v63 = vld [vmem:[#allocation2 + $0x528] ss:$16 sps:$4 sm:$0xff]  }
  0xbe   :  { %2017 = vmatpush1.bf16.msra.mxu0 %v3519_v62  ;;  %v3584_v62 = vld [vmem:[#allocation2 + $0x52c] ss:$16 sps:$4 sm:$0xff]  }
  0xbf   :  { %2018 = vmatprep.subr.bf16.mxu0 %v3527_v0  ;;  %v3680_v0 = vld [vmem:[%s4233_s4 + $0x94] ss:$8 sps:$4 sm:$0xff]  }
  0xc0   :  { %2101 = vmatpush1.bf16.msra.mxu1 %v3528_v2  ;;  %v3678_v2 = vld [vmem:[%s4233_s4 + $0x90] ss:$8 sps:$4 sm:$0xff]  }
  0xc1   :  { %2102 = vmatprep.subr.bf16.mxu1 %v3536_v3  ;;  %v3585_v3 = vld [vmem:[#allocation2 + $0x548] ss:$16 sps:$4 sm:$0xff]  }
  0xc2   :  { %2019 = vmatpush1.bf16.msra.mxu0 %v3525_v1  ;;  %v3587_v1 = vld [vmem:[#allocation2 + $0x54c] ss:$16 sps:$4 sm:$0xff]  }
  0xc3   :  { %2020 = vmatprep.subr.bf16.mxu0 %v3533_v4  ;;  %v3683_v4 = vld [vmem:[%s4233_s4 + $0xa4] ss:$8 sps:$4 sm:$0xff]  }
  0xc4   :  { %2103 = vmatpush1.bf16.msra.mxu1 %v3534_v5  ;;  %v3681_v5 = vld [vmem:[%s4233_s4 + $0xa0] ss:$8 sps:$4 sm:$0xff]  }
  0xc5   :  { %2104 = vmatprep.subr.bf16.mxu1 %v3542_v6  ;;  %v3588_v6 = vld [vmem:[#allocation2 + $0x568] ss:$16 sps:$4 sm:$0xff]  }
  0xc6   :  { %2021 = vmatpush1.bf16.msra.mxu0 %v3531_v57  ;;  %v3590_v57 = vld [vmem:[#allocation2 + $0x56c] ss:$16 sps:$4 sm:$0xff]  }
  0xc7   :  { %2022 = vmatprep.subr.bf16.mxu0 %v3539_v7  ;;  %v3686_v7 = vld [vmem:[%s4233_s4 + $0xb4] ss:$8 sps:$4 sm:$0xff]  }
  0xc8   :  { %2105 = vmatpush1.bf16.msra.mxu1 %v3540_v9  ;;  %v3684_v9 = vld [vmem:[%s4233_s4 + $0xb0] ss:$8 sps:$4 sm:$0xff]  }
  0xc9   :  { %2106 = vmatprep.subr.bf16.mxu1 %v3548_v10  ;;  %v3591_v10 = vld [vmem:[#allocation2 + $0x588] ss:$16 sps:$4 sm:$0xff]  }
  0xca   :  { %2023 = vmatpush1.bf16.msra.mxu0 %v3537_v8  ;;  %v3593_v8 = vld [vmem:[#allocation2 + $0x58c] ss:$16 sps:$4 sm:$0xff]  }
  0xcb   :  { %2024 = vmatprep.subr.bf16.mxu0 %v3545_v11  ;;  %v3689_v11 = vld [vmem:[%s4233_s4 + $0xc4] ss:$8 sps:$4 sm:$0xff]  }
  0xcc   :  { %2107 = vmatpush1.bf16.msra.mxu1 %v3546_v16  ;;  %v3687_v16 = vld [vmem:[%s4233_s4 + $0xc0] ss:$8 sps:$4 sm:$0xff]  }
  0xcd   :  { %2108 = vmatprep.subr.bf16.mxu1 %v3554_v18  ;;  %v3594_v18 = vld [vmem:[#allocation2 + $0x5a8] ss:$16 sps:$4 sm:$0xff]  }
  0xce   :  { %2025 = vmatpush1.bf16.msra.mxu0 %v3543_v15  ;;  %v3596_v15 = vld [vmem:[#allocation2 + $0x5ac] ss:$16 sps:$4 sm:$0xff]  }
  0xcf   :  { %2026 = vmatprep.subr.bf16.mxu0 %v3551_v19  ;;  %v3692_v19 = vld [vmem:[%s4233_s4 + $0xd4] ss:$8 sps:$4 sm:$0xff]  }
  0xd0   :  { %2109 = vmatpush1.bf16.msra.mxu1 %v3552_v20  ;;  %v3690_v20 = vld [vmem:[%s4233_s4 + $0xd0] ss:$8 sps:$4 sm:$0xff]  }
  0xd1   :  { %2119 = vmatprep.subr.bf16.mxu1 %v3557_v21  ;;  %v3597_v21 = vld [vmem:[#allocation2 + $0x5c8] ss:$16 sps:$4 sm:$0xff]  }
  0xd2   :  { %2027 = vmatpush1.bf16.msra.mxu0 %v3549_v46  ;;  %v3599_v46 = vld [vmem:[#allocation2 + $0x5cc] ss:$16 sps:$4 sm:$0xff]  }
  0xd3   :  { %2111 = vmatmul.mubr.bf16.vlgmr.msra.gmra.mrb[4].mxu1 %v3921_v40  ;;  %v3563_v40 = vld [vmem:[#allocation2 + $0x44c] ss:$16 sps:$4 sm:$0xff]   ;;  %2605 = vmatprep.subr.bf16.mxu0 %v3653_v32  ;;  %v3603_v32 = vld [vmem:[#allocation2 + $0x608] ss:$16 sps:$4 sm:$0xff]  }
  0xd4   :  { %2120 = vmatpush1.bf16.msra.mxu1 %v3555_v12  ;;  %2151 = vmatprep.mubr.bf16.mxu1 %v3931_v45  ;;  %v3659_v45 = vld [vmem:[%s4233_s4 + $0x24] ss:$8 sps:$4 sm:$0xff]  }
  0xd5   :  { %2029 = vmatmul.mubr.bf16.vlgmr.msra.gmra.mrb[0].mxu0 %v3957_v31  ;;  %2121 = vmatprep.subr.bf16.mxu1 %v3560_v22  ;;  %v3602_v12 = vld [vmem:[#allocation2 + $0x5ec] ss:$16 sps:$4 sm:$0xff]   ;;  %v3600_v22 = vld [vmem:[#allocation2 + $0x5e8] ss:$16 sps:$4 sm:$0xff]  }
  0xd6   :  { %2606 = vmatpush1.bf16.msra.mxu0 %v3651_v23  ;;  %v3605_v23 = vld [vmem:[#allocation2 + $0x60c] ss:$16 sps:$4 sm:$0xff]  }
  0xd7   :  { %2607 = vmatprep.subr.bf16.mxu0 %v3656_v14  ;;  %v3606_v14 = vld [vmem:[#allocation2 + $0x628] ss:$16 sps:$4 sm:$0xff]  }
  0xd8   :  { %2122 = vmatpush1.bf16.msra.mxu1 %v3558_v24  ;;  %v3608_v24 = vld [vmem:[#allocation2 + $0x62c] ss:$16 sps:$4 sm:$0xff]  }
  0xd9   :  { %2123 = vmatprep.subr.bf16.mxu1 %v3563_v40  ;;  %v3611_v40 = vld [vmem:[#allocation2 + $0x64c] ss:$16 sps:$4 sm:$0xff]  }
  0xda   :  { %2608 = vmatpush1.bf16.msra.mxu0 %v3654_v25  ;;  %v3609_v25 = vld [vmem:[#allocation2 + $0x648] ss:$16 sps:$4 sm:$0xff]  }
  0xdb   :  { %2609 = vmatprep.subr.bf16.mxu0 %v3659_v45  ;;  %v3612_v45 = vld [vmem:[#allocation2 + $0x668] ss:$16 sps:$4 sm:$0xff]  }
  0xdc   :  { %2124 = vmatpush1.bf16.msra.mxu1 %v3561_v26  ;;  %v3614_v26 = vld [vmem:[#allocation2 + $0x66c] ss:$16 sps:$4 sm:$0xff]  }
  0xdd   :  { %2125 = vmatprep.subr.bf16.mxu1 %v3566_v27  ;;  %v3617_v27 = vld [vmem:[#allocation2 + $0x68c] ss:$16 sps:$4 sm:$0xff]  }
  0xde   :  { %2610 = vmatpush1.bf16.msra.mxu0 %v3657_v30  ;;  %v3623_v30 = vld [vmem:[#allocation2 + $0x6cc] ss:$16 sps:$4 sm:$0xff]  }
  0xdf   :  { %2611 = vmatprep.subr.bf16.mxu0 %v3662_v56 }
  0xe0   :  { %2126 = vmatpush1.bf16.msra.mxu1 %v3564_v28  ;;  %v3615_v28 = vld [vmem:[#allocation2 + $0x688] ss:$16 sps:$4 sm:$0xff]  }
  0xe1   :  { %2127 = vmatprep.subr.bf16.mxu1 %v3569_v29  ;;  %v3620_v29 = vld [vmem:[#allocation2 + $0x6ac] ss:$16 sps:$4 sm:$0xff]  }
  0xe2   :  { %2612 = vmatpush1.bf16.msra.mxu0 %v3660_v33  ;;  %v3695_v33 = vld [vmem:[%s4233_s4 + $0xe4] ss:$8 sps:$4 sm:$0xff]  }
  0xe3   :  { %2613 = vmatprep.subr.bf16.mxu0 %v3665_v35  ;;  %v3621_v35 = vld [vmem:[#allocation2 + $0x6c8] ss:$16 sps:$4 sm:$0xff]  }
  0xe4   :  { %2128 = vmatpush1.bf16.msra.mxu1 %v3567_v34 }
  0xe5   :  { %2129 = vmatprep.subr.bf16.mxu1 %v3572_v36  ;;  %v3693_v36 = vld [vmem:[%s4233_s4 + $0xe0] ss:$8 sps:$4 sm:$0xff]  }
  0xe6   :  { %2614 = vmatpush1.bf16.msra.mxu0 %v3663_v37 }
  0xe7   :  { %2615 = vmatprep.subr.bf16.mxu0 %v3668_v55  ;;  %v3698_v55 = vld [vmem:[%s4233_s4 + $0xf4] ss:$8 sps:$4 sm:$0xff]  }
  0xe8   :  { %2130 = vmatpush1.bf16.msra.mxu1 %v3570_v38  ;;  %v3626_v38 = vld [vmem:[#allocation2 + $0x6ec] ss:$16 sps:$4 sm:$0xff]  }
  0xe9   :  { %2131 = vmatprep.subr.bf16.mxu1 %v3575_v39  ;;  %v3624_v39 = vld [vmem:[#allocation2 + $0x6e8] ss:$16 sps:$4 sm:$0xff]  }
  0xea   :  { %2616 = vmatpush1.bf16.msra.mxu0 %v3666_v41  ;;  %v3696_v41 = vld [vmem:[%s4233_s4 + $0xf0] ss:$8 sps:$4 sm:$0xff]  }
  0xeb   :  { %2617 = vmatprep.subr.bf16.mxu0 %v3671_v43  ;;  %v3627_v43 = vld [vmem:[#allocation2 + $0x708] ss:$16 sps:$4 sm:$0xff]  }
  0xec   :  { %2132 = vmatpush1.bf16.msra.mxu1 %v3573_v42  ;;  %v3629_v42 = vld [vmem:[#allocation2 + $0x70c] ss:$16 sps:$4 sm:$0xff]  }
  0xed   :  { %2133 = vmatprep.subr.bf16.mxu1 %v3578_v44  ;;  %v3632_v44 = vld [vmem:[#allocation2 + $0x72c] ss:$16 sps:$4 sm:$0xff]  }
  0xee   :  { %2618 = vmatpush1.bf16.msra.mxu0 %v3669_v47  ;;  %v3701_v47 = vld [vmem:[%s4233_s4 + $0x104] ss:$8 sps:$4 sm:$0xff]  }
  0xef   :  { %2619 = vmatprep.subr.bf16.mxu0 %v3674_v51  ;;  %v3635_v51 = vld [vmem:[#allocation2 + $0x74c] ss:$16 sps:$4 sm:$0xff]  }
  0xf0   :  { %2134 = vmatpush1.bf16.msra.mxu1 %v3576_v50  ;;  %v3630_v50 = vld [vmem:[#allocation2 + $0x728] ss:$16 sps:$4 sm:$0xff]  }
  0xf1   :  { %2135 = vmatprep.subr.bf16.mxu1 %v3581_v54  ;;  %v3633_v54 = vld [vmem:[#allocation2 + $0x748] ss:$16 sps:$4 sm:$0xff]  }
  0xf2   :  { %2620 = vmatpush1.bf16.msra.mxu0 %v3672_v59  ;;  %v3638_v59 = vld [vmem:[#allocation2 + $0x76c] ss:$16 sps:$4 sm:$0xff]  }
  0xf3   :  { %2621 = vmatprep.subr.bf16.mxu0 %v3677_v61  ;;  %v3641_v61 = vld [vmem:[#allocation2 + $0x78c] ss:$16 sps:$4 sm:$0xff]  }
  0xf4   :  { %2136 = vmatpush1.bf16.msra.mxu1 %v3579_v60  ;;  %v3636_v60 = vld [vmem:[#allocation2 + $0x768] ss:$16 sps:$4 sm:$0xff]  }
  0xf5   :  { %2137 = vmatprep.subr.bf16.mxu1 %v3584_v62  ;;  %v3639_v62 = vld [vmem:[#allocation2 + $0x788] ss:$16 sps:$4 sm:$0xff]  }
  0xf6   :  { %2622 = vmatpush1.bf16.msra.mxu0 %v3675_v58  ;;  %v3644_v58 = vld [vmem:[#allocation2 + $0x7ac] ss:$16 sps:$4 sm:$0xff]  }
  0xf7   :  { %2623 = vmatprep.subr.bf16.mxu0 %v3680_v0  ;;  %v3647_v0 = vld [vmem:[#allocation2 + $0x7cc] ss:$16 sps:$4 sm:$0xff]  }
  0xf8   :  { %2138 = vmatpush1.bf16.msra.mxu1 %v3582_v63  ;;  %v3642_v63 = vld [vmem:[#allocation2 + $0x7a8] ss:$16 sps:$4 sm:$0xff]  }
  0xf9   :  { %2139 = vmatprep.subr.bf16.mxu1 %v3587_v1  ;;  %v3645_v1 = vld [vmem:[#allocation2 + $0x7c8] ss:$16 sps:$4 sm:$0xff]  }
  0xfa   :  { %2624 = vmatpush1.bf16.msra.mxu0 %v3678_v2  ;;  %v3650_v2 = vld [vmem:[#allocation2 + $0x7ec] ss:$16 sps:$4 sm:$0xff]  }
  0xfb   :  { %2625 = vmatprep.subr.bf16.mxu0 %v3683_v4  ;;  %v4067_v4 = vld [vmem:[%s4232_s3] sm:$0xf] }
  0xfc   :  { %2140 = vmatpush1.bf16.msra.mxu1 %v3585_v3  ;;  %v3648_v3 = vld [vmem:[#allocation2 + $0x7e8] ss:$16 sps:$4 sm:$0xff]  }
  0xfd   :  { %2141 = vmatprep.subr.bf16.mxu1 %v3590_v57  ;;  %v511_v57 = vrot.slane %v4067_v4, %v3848_v48 }
  0xfe   :  { %2626 = vmatpush1.bf16.msra.mxu0 %v3681_v5  ;;  %v515_v5 = vrot.slane %v4067_v4, %v3850_v49 }
  0xff   :  { %2627 = vmatprep.subr.bf16.mxu0 %v3686_v7 }
 0x100   :  { %2142 = vmatpush1.bf16.msra.mxu1 %v3588_v6 }
 0x101   :  { %2143 = vmatprep.subr.bf16.mxu1 %v3593_v8 }
 0x102   :  { %2628 = vmatpush1.bf16.msra.mxu0 %v3684_v9 }
 0x103   :  { %2629 = vmatprep.subr.bf16.mxu0 %v3689_v11 }
 0x104   :  { %2144 = vmatpush1.bf16.msra.mxu1 %v3591_v10 }
 0x105   :  { %2145 = vmatprep.subr.bf16.mxu1 %v3596_v15 }
 0x106   :  { %2630 = vmatpush1.bf16.msra.mxu0 %v3687_v16 }
 0x107   :  { %2631 = vmatprep.subr.bf16.mxu0 %v3692_v19 }
 0x108   :  { %2146 = vmatpush1.bf16.msra.mxu1 %v3594_v18 }
 0x109   :  { %2147 = vmatprep.subr.bf16.mxu1 %v3599_v46  ;;  %v3699_v46 = vld [vmem:[%s4233_s4 + $0x100] ss:$8 sps:$4 sm:$0xff]  }
 0x10a   :  { %2632 = vmatpush1.bf16.msra.mxu0 %v3690_v20  ;;  %v3704_v20 = vld [vmem:[%s4233_s4 + $0x114] ss:$8 sps:$4 sm:$0xff]  }
 0x10b   :  { %2633 = vmatprep.subr.bf16.mxu0 %v3695_v33  ;;  %v3716_v33 = vld [vmem:[%s4233_s4 + $0x154] ss:$8 sps:$4 sm:$0xff]  }
 0x10c   :  { %2148 = vmatpush1.bf16.msra.mxu1 %v3597_v21 }
 0x10d   :  { %2149 = vmatprep.subr.bf16.mxu1 %v3602_v12  ;;  %v3747_v12 = vld [vmem:[%s4235_s6 + $0x40] sm:$0xff]  }
 0x10e   :  { %2634 = vmatpush1.bf16.msra.mxu0 %v3693_v36  ;;  %v3758_v36 = vld [vmem:[%s4235_s6 + $0x28] sm:$0xff]  }
 0x10f   :  { %2635 = vmatprep.subr.bf16.mxu0 %v3698_v55  ;;  %v3722_v55 = vld [vmem:[%s4233_s4 + $0x174] ss:$8 sps:$4 sm:$0xff]  }
 0x110   :  { %2150 = vmatpush1.bf16.msra.mxu1 %v3600_v22  ;;  %v3748_v22 = vld [vmem:[%s4235_s6] sm:$0xff]  }
 0x111   :  { %2160 = vmatprep.subr.bf16.mxu1 %v3605_v23  ;;  %v3749_v23 = vld [vmem:[%s4235_s6 + $0x48] sm:$0xff]  }
 0x112   :  { %2636 = vmatpush1.bf16.msra.mxu0 %v3696_v41  ;;  %v3725_v41 = vld [vmem:[%s4233_s4 + $0x184] ss:$8 sps:$4 sm:$0xff]  }
 0x113   :  { %2152 = vmatmul.mubr.bf16.vlgmr.msra.gmra.mrb[4].mxu1 %v3945_v13  ;;  %v3618_v13 = vld [vmem:[#allocation2 + $0x6a8] ss:$16 sps:$4 sm:$0xff]   ;;  %2646 = vmatprep.subr.bf16.mxu0 %v3701_v47  ;;  %v3731_v47 = vld [vmem:[%s4233_s4 + $0x1a4] ss:$8 sps:$4 sm:$0xff]  }
 0x114   :  { %2161 = vmatpush1.bf16.msra.mxu1 %v3603_v32  ;;  %2192 = vmatprep.mubr.bf16.mxu1 %v3949_v17  ;;  %v3702_v32 = vld [vmem:[%s4233_s4 + $0x110] ss:$8 sps:$4 sm:$0xff]  }
 0x115   :  { %2162 = vmatprep.subr.bf16.mxu1 %v3608_v24  ;;  %v3750_v24 = vld [vmem:[%s4235_s6 + $0x8] sm:$0xff]  }
 0x118   :  { %2163 = vmatpush1.bf16.msra.mxu1 %v3606_v14  ;;  %v3707_v14 = vld [vmem:[%s4233_s4 + $0x124] ss:$8 sps:$4 sm:$0xff]  }
 0x119   :  { %2164 = vmatprep.subr.bf16.mxu1 %v3611_v40  ;;  %v3751_v40 = vld [vmem:[%s4235_s6 + $0x50] sm:$0xff]  }
 0x11c   :  { %2165 = vmatpush1.bf16.msra.mxu1 %v3609_v25  ;;  %v3705_v25 = vld [vmem:[%s4233_s4 + $0x120] ss:$8 sps:$4 sm:$0xff]  }
 0x11d   :  { %2166 = vmatprep.subr.bf16.mxu1 %v3614_v26  ;;  %v3752_v26 = vld [vmem:[%s4235_s6 + $0x10] sm:$0xff]  }
 0x120   :  { %2167 = vmatpush1.bf16.msra.mxu1 %v3612_v45  ;;  %v3710_v45 = vld [vmem:[%s4233_s4 + $0x134] ss:$8 sps:$4 sm:$0xff]  }
 0x121   :  { %2168 = vmatprep.subr.bf16.mxu1 %v3617_v27  ;;  %v3753_v27 = vld [vmem:[%s4235_s6 + $0x58] sm:$0xff]  }
 0x124   :  { %2169 = vmatpush1.bf16.msra.mxu1 %v3615_v28  ;;  %v3708_v28 = vld [vmem:[%s4233_s4 + $0x130] ss:$8 sps:$4 sm:$0xff]  }
 0x125   :  { %2170 = vmatprep.subr.bf16.mxu1 %v3620_v29  ;;  %v3754_v29 = vld [vmem:[%s4235_s6 + $0x18] sm:$0xff]  }
 0x126   :  { %v1907_v56 = vpop.f32.mrb[0].mxu1 }
 0x127   :  { %v1909_v17 = vpop.f32.mrb[1].mxu1  ;;  %v1908_v6 = vadd.f32 %v1907_v56, %v511_v57  ;;  %v3711_v56 = vld [vmem:[%s4233_s4 + $0x140] ss:$8 sps:$4 sm:$0xff]  }
 0x128   :  { %v1911_v34 = vpop.f32.mrb[2].mxu1  ;;  %2171 = vmatpush1.bf16.msra.mxu1 %v3618_v13  ;;  %v1910_v7 = vadd.f32 %v1909_v17, %v515_v5  ;;  %v3713_v13 = vld [vmem:[%s4233_s4 + $0x144] ss:$8 sps:$4 sm:$0xff]  }
 0x129   :  { %v1912_v37 = vpop.f32.mrb[3].mxu1  ;;  %2172 = vmatprep.subr.bf16.mxu1 %v3623_v30  ;;  %v3755_v30 = vld [vmem:[%s4235_s6 + $0x60] sm:$0xff]   ;;  %v3757_v34 = vld [vmem:[%s4235_s6 + $0x68] sm:$0xff]  }
 0x12a   :  { %v3756_v17 = vld [vmem:[%s4235_s6 + $0x20] sm:$0xff]  }
 0x12b   :  { %v3719_v37 = vld [vmem:[%s4233_s4 + $0x164] ss:$8 sps:$4 sm:$0xff]  }
 0x12c   :  { %2173 = vmatpush1.bf16.msra.mxu1 %v3621_v35  ;;  %v3714_v35 = vld [vmem:[%s4233_s4 + $0x150] ss:$8 sps:$4 sm:$0xff]  }
 0x12d   :  { %2174 = vmatprep.subr.bf16.mxu1 %v3626_v38  ;;  %v3717_v38 = vld [vmem:[%s4233_s4 + $0x160] ss:$8 sps:$4 sm:$0xff]  }
 0x130   :  { %2175 = vmatpush1.bf16.msra.mxu1 %v3624_v39  ;;  %v3720_v39 = vld [vmem:[%s4233_s4 + $0x170] ss:$8 sps:$4 sm:$0xff]  }
 0x131   :  { %2176 = vmatprep.subr.bf16.mxu1 %v3629_v42  ;;  %v3723_v42 = vld [vmem:[%s4233_s4 + $0x180] ss:$8 sps:$4 sm:$0xff]  }
 0x134   :  { %2177 = vmatpush1.bf16.msra.mxu1 %v3627_v43  ;;  %v3728_v43 = vld [vmem:[%s4233_s4 + $0x194] ss:$8 sps:$4 sm:$0xff]  }
 0x135   :  { %2178 = vmatprep.subr.bf16.mxu1 %v3632_v44  ;;  %v3726_v44 = vld [vmem:[%s4233_s4 + $0x190] ss:$8 sps:$4 sm:$0xff]  }
 0x138   :  { %2179 = vmatpush1.bf16.msra.mxu1 %v3630_v50  ;;  %v3729_v50 = vld [vmem:[%s4233_s4 + $0x1a0] ss:$8 sps:$4 sm:$0xff]  }
 0x139   :  { %2180 = vmatprep.subr.bf16.mxu1 %v3635_v51  ;;  %v3734_v51 = vld [vmem:[%s4233_s4 + $0x1b4] ss:$8 sps:$4 sm:$0xff]  }
 0x13c   :  { %2181 = vmatpush1.bf16.msra.mxu1 %v3633_v54  ;;  %v3732_v54 = vld [vmem:[%s4233_s4 + $0x1b0] ss:$8 sps:$4 sm:$0xff]  }
 0x13d   :  { %2182 = vmatprep.subr.bf16.mxu1 %v3638_v59  ;;  %v3737_v59 = vld [vmem:[%s4233_s4 + $0x1c4] ss:$8 sps:$4 sm:$0xff]  }
 0x140   :  { %2183 = vmatpush1.bf16.msra.mxu1 %v3636_v60  ;;  %v3735_v60 = vld [vmem:[%s4233_s4 + $0x1c0] ss:$8 sps:$4 sm:$0xff]  }
 0x141   :  { %2184 = vmatprep.subr.bf16.mxu1 %v3641_v61  ;;  %v3740_v61 = vld [vmem:[%s4233_s4 + $0x1d4] ss:$8 sps:$4 sm:$0xff]  }
 0x144   :  { %2185 = vmatpush1.bf16.msra.mxu1 %v3639_v62  ;;  %v3738_v62 = vld [vmem:[%s4233_s4 + $0x1d0] ss:$8 sps:$4 sm:$0xff]  }
 0x145   :  { %2186 = vmatprep.subr.bf16.mxu1 %v3644_v58  ;;  %v3743_v58 = vld [vmem:[%s4233_s4 + $0x1e4] ss:$8 sps:$4 sm:$0xff]  }
 0x148   :  { %2187 = vmatpush1.bf16.msra.mxu1 %v3642_v63  ;;  %v3741_v63 = vld [vmem:[%s4233_s4 + $0x1e0] ss:$8 sps:$4 sm:$0xff]  }
 0x149   :  { %2188 = vmatprep.subr.bf16.mxu1 %v3647_v0  ;;  %v3746_v0 = vld [vmem:[%s4233_s4 + $0x1f4] ss:$8 sps:$4 sm:$0xff]  }
 0x14c   :  { %2189 = vmatpush1.bf16.msra.mxu1 %v3645_v1  ;;  %v3744_v1 = vld [vmem:[%s4233_s4 + $0x1f0] ss:$8 sps:$4 sm:$0xff]  }
 0x14d   :  { %2190 = vmatprep.subr.bf16.mxu1 %v3650_v2  ;;  %v519_v2 = vrot.slane %v4067_v4, %v3852_v52  ;;  %v3760_v52 = vld [vmem:[%s4235_s6 + $0x30] sm:$0xff]  }
 0x150   :  { %2191 = vmatpush1.bf16.msra.mxu1 %v3648_v3  ;;  %v523_v3 = vrot.slane %v4067_v4, %v3854_v53  ;;  %v3761_v53 = vld [vmem:[%s4235_s6 + $0x78] sm:$0xff]  }
 0x151   :  { %3209 = vmatprep.subr.bf16.mxu1 %v3747_v12  ;;  %v3762_v4 = vld [vmem:[%s4235_s6 + $0x38] sm:$0xff]  }
 0x153   :  { %2193 = vmatmul.mubr.bf16.vlgmr.msra.gmra.mrb[4].mxu1 %v3957_v31 }
 0x154   :  { %3210 = vmatpush3.bf16.msra.mxu1 %v3748_v22 }
 0x155   :  { %3211 = vmatprep.subr.bf16.mxu1 %v3749_v23 }
 0x158   :  { %3212 = vmatpush3.bf16.msra.mxu1 %v3750_v24 }
 0x159   :  { %3213 = vmatprep.subr.bf16.mxu1 %v3751_v40 }
 0x15c   :  { %3214 = vmatpush3.bf16.msra.mxu1 %v3752_v26 }
 0x15d   :  { %3215 = vmatprep.subr.bf16.mxu1 %v3753_v27 }
 0x160   :  { %3216 = vmatpush3.bf16.msra.mxu1 %v3754_v29 }
 0x161   :  { %3217 = vmatprep.subr.bf16.mxu1 %v3755_v30 }
 0x164   :  { %3218 = vmatpush3.bf16.msra.mxu1 %v3756_v17 }
 0x165   :  { %3219 = vmatprep.subr.bf16.mxu1 %v3757_v34 }
 0x168   :  { %3220 = vmatpush3.bf16.msra.mxu1 %v3758_v36 }
 0x1a8   :  { %v2030_v8 = vpop.f32.mrb[0].mxu0 }
 0x1a9   :  { %v3232_v9 = vadd.f32 %v2030_v8, %v1908_v6  ;;  %v2032_v10 = vpop.f32.mrb[1].mxu0 }
 0x1aa   :  { %v3234_v11 = vadd.f32 %v2032_v10, %v1910_v7  ;;  %v2034_v15 = vpop.f32.mrb[2].mxu0 }
 0x1ab   :  { %v2201_v16 = vmax.f32 %v3232_v9, 0.0  ;;  %v2035_v31 = vpop.f32.mrb[3].mxu0 }
 0x1ac   :  { %v2202_v18 = vmax.f32 %v3234_v11, 0.0  ;;  %v3759_v31 = vld [vmem:[%s4235_s6 + $0x70] sm:$0xff]  }
 0x1ad   :  { %v2205_v21 = vpack.c.bf16 %v2201_v16, %v2201_v16  ;;  %3221 = vmatprep.subr.bf16.mxu1 %v3759_v31 }
 0x1ae   :  { %v2206_v19 = vpack.c.bf16 %v2202_v18, %v2202_v18  ;;  %3222 = vmatpush3.bf16.msra.mxu1 %v3760_v52  ;;  %v2273_v18 = vld [vmem:[%s4234_s5] sm:$0x3] }
 0x1af   :  { %3223 = vmatprep.subr.bf16.mxu1 %v3761_v53 }
 0x1b0   :  { %2637 = vmatprep.mubr.bf16.mxu0 %v2206_v19  ;;  %v2278_v19 = vrot.slane %v2273_v18, %v3848_v48 }
 0x1b1   :  { %2638 = vmatmul.mubr.bf16.vlgmr.msra.gmra.mrb[4].mxu0 %v2205_v21 }
 0x1b2   :  { %2647 = vmatpush1.bf16.msra.mxu0 %v3699_v46  ;;  %3224 = vmatpush3.bf16.msra.mxu1 %v3762_v4  ;;  %v2282_v46 = vrot.slane %v2273_v18, %v3850_v49 }
 0x1b3   :  { %2648 = vmatprep.subr.bf16.mxu0 %v3704_v20 }
 0x1b6   :  { %2649 = vmatpush1.bf16.msra.mxu0 %v3702_v32 }
 0x1b7   :  { %2650 = vmatprep.subr.bf16.mxu0 %v3707_v14 }
 0x1ba   :  { %2651 = vmatpush1.bf16.msra.mxu0 %v3705_v25 }
 0x1bb   :  { %2652 = vmatprep.subr.bf16.mxu0 %v3710_v45  ;;  %v3192_v45 = vld [vmem:[%s4236_s7] ss:$0 sm:$0xff] }
 0x1be   :  { %2653 = vmatpush1.bf16.msra.mxu0 %v3708_v28 }
 0x1bf   :  { %2654 = vmatprep.subr.bf16.mxu0 %v3713_v13 }
 0x1c2   :  { %2655 = vmatpush1.bf16.msra.mxu0 %v3711_v56 }
 0x1c3   :  { %2656 = vmatprep.subr.bf16.mxu0 %v3716_v33 }
 0x1c6   :  { %2657 = vmatpush1.bf16.msra.mxu0 %v3714_v35 }
 0x1c7   :  { %2658 = vmatprep.subr.bf16.mxu0 %v3719_v37 }
 0x1ca   :  { %2659 = vmatpush1.bf16.msra.mxu0 %v3717_v38 }
 0x1cb   :  { %2660 = vmatprep.subr.bf16.mxu0 %v3722_v55 }
 0x1ce   :  { %2661 = vmatpush1.bf16.msra.mxu0 %v3720_v39 }
 0x1cf   :  { %2662 = vmatprep.subr.bf16.mxu0 %v3725_v41 }
 0x1d2   :  { %2663 = vmatpush1.bf16.msra.mxu0 %v3723_v42 }
 0x1d3   :  { %2664 = vmatprep.subr.bf16.mxu0 %v3728_v43 }
 0x1d6   :  { %2665 = vmatpush1.bf16.msra.mxu0 %v3726_v44 }
 0x1d7   :  { %2666 = vmatprep.subr.bf16.mxu0 %v3731_v47 }
 0x1da   :  { %2667 = vmatpush1.bf16.msra.mxu0 %v3729_v50 }
 0x1db   :  { %2668 = vmatprep.subr.bf16.mxu0 %v3734_v51 }
 0x1de   :  { %2669 = vmatpush1.bf16.msra.mxu0 %v3732_v54 }
 0x1df   :  { %2670 = vmatprep.subr.bf16.mxu0 %v3737_v59 }
 0x1e2   :  { %2671 = vmatpush1.bf16.msra.mxu0 %v3735_v60 }
 0x1e3   :  { %2672 = vmatprep.subr.bf16.mxu0 %v3740_v61 }
 0x1e6   :  { %2673 = vmatpush1.bf16.msra.mxu0 %v3738_v62 }
 0x1e7   :  { %2674 = vmatprep.subr.bf16.mxu0 %v3743_v58 }
 0x1ea   :  { %2675 = vmatpush1.bf16.msra.mxu0 %v3741_v63 }
 0x1eb   :  { %2676 = vmatprep.subr.bf16.mxu0 %v3746_v0 }
 0x1ee   :  { %2677 = vmatpush1.bf16.msra.mxu0 %v3744_v1 }
 0x226   :  { %v2194_v57 = vpop.f32.mrb[4].mxu1 }
 0x227   :  { %v3235_v5 = vadd.f32 %v2194_v57, %v519_v2  ;;  %v2196_v6 = vpop.f32.mrb[5].mxu1 }
 0x228   :  { %v3236_v7 = vadd.f32 %v2196_v6, %v523_v3  ;;  %v2198_v8 = vpop.f32.mrb[6].mxu1 }
 0x229   :  { %v2203_v9 = vmax.f32 %v3235_v5, 0.0  ;;  %v2199_v10 = vpop.f32.mrb[7].mxu1 }
 0x22a   :  { %v2204_v11 = vmax.f32 %v3236_v7, 0.0 }
 0x22b   :  { %v2207_v16 = vpack.c.bf16 %v2203_v9, %v2203_v9 }
 0x22c   :  { %v2208_v15 = vpack.c.bf16 %v2204_v11, %v2204_v11 }
 0x22e   :  { %2678 = vmatprep.mubr.bf16.mxu0 %v2208_v15 }
 0x22f   :  { %2679 = vmatmul.mubr.bf16.vlgmr.msra.gmra.mrb[4].mxu0 %v2207_v16 }
 0x302   :  { %v2680_v20 = vpop.f32.mrb[4].mxu0 }
 0x303   :  { %v3237_v21 = vadd.f32 %v2680_v20, %v2278_v19  ;;  %v2682_v12 = vpop.f32.mrb[5].mxu0 }
 0x304   :  { %v3238_v22 = vadd.f32 %v2682_v12, %v2282_v46  ;;  %v2684_v23 = vpop.f32.mrb[6].mxu0 }
 0x305   :  { %v2687_v32 = vmax.f32 %v3237_v21, 0.0  ;;  %v2685_v24 = vpop.f32.mrb[7].mxu0 }
 0x306   :  { %v2688_v14 = vmax.f32 %v3238_v22, 0.0 }
 0x307   :  { %v2689_v25 = vpack.c.bf16 %v2687_v32, %v2687_v32 }
 0x308   :  { %v2690_v40 = vpack.c.bf16 %v2688_v14, %v2688_v14 }
 0x30a   :  { %2858 = vmatprep.mubr.bf16.mxu1 %v2690_v40 }
 0x30b   :  { %2859 = vmatmul.mubr.bf16.vlgmr.msra.gmra.mrb[8].mxu1 %v2689_v25 }
 0x3de   :  { %v3225_v26 = vpop.f32.mrb[8].mxu1 }
 0x3df   :  { %v3226_v48 = vpop.f32.mrb[9].mxu1 }
 0x3e0   :  { %v3227_v27 = vadd.f32 %v3226_v48, %v3225_v26  ;;  %v3228_v49 = vpop.f32.mrb[10].mxu1 }
 0x3e1   :  { %v3229_v28 = vpop.f32.mrb[11].mxu1 }
 0x3e2   :  { %v2861_v29 = vadd.f32 %v3227_v27, %v3192_v45 }
 0x3e4   :  { %2866 = vst [vmem:[%s4237_s8] sm:$0x3] %v2861_v29 }
 0x3e5   :  { %2871 = vsyncpa [#allocation3], 1 }

</bundles_post_ra>
